<compile_context>
chip_gen: v7x
topology: tpu7x:2x2x1
jax: 0.10.0
libtpu: 0.0.40
codegen_flags: <defaults>
</compile_context>

<pallas_src>
import math
import jax
import jax.numpy as jnp
from jax.experimental import pallas as pl
from jax.experimental.pallas import tpu as pltpu

# Small hyperparameters consistent with the tutorial-style Transformer.
D_MODEL = 32
D_FF    = 64
D_K     = 8
D_V     = 8
N_HEADS = 4
LN_EPS  = 1e-5
SCALE   = 1.0 / math.sqrt(D_K)


def _layer_norm(y):
    # nn.LayerNorm(d_model) with default gamma=1, beta=0
    mu  = jnp.mean(y, axis=-1, keepdims=True)
    var = jnp.mean((y - mu) ** 2, axis=-1, keepdims=True)
    return (y - mu) * jax.lax.rsqrt(var + LN_EPS)


# ---------------------------------------------------------------------------
# Fused decoder-layer kernel (one batch element per grid step)
# ---------------------------------------------------------------------------
def _attention_block(x_q, x_k, x_v, mask, wq, wk, wv, wo):
    """Multi-head attention + residual + LayerNorm on VMEM-resident tiles.

    wq is expected to be pre-scaled by 1/sqrt(d_k) (folded in at trace time).
    Returns (ln(out + x_q), attn_packed) where attn_packed is (Sq, H*Sk)
    with heads packed along the lane (last) dimension.
    """
    # Full-width projections: 3 matmuls instead of 12 per-head ones.
    q_all = jnp.dot(x_q, wq, preferred_element_type=jnp.float32)   # (Sq, H*dk)
    k_all = jnp.dot(x_k, wk, preferred_element_type=jnp.float32)   # (Sk, H*dk)
    v_all = jnp.dot(x_v, wv, preferred_element_type=jnp.float32)   # (Sk, H*dv)

    # One XLU transpose of the whole K tile instead of one per head.
    kT = k_all.T                                                    # (H*dk, Sk)

    ctx_cols, attn_cols = [], []
    for h in range(N_HEADS):                     # static loop; per-head lane slices
        q_h  = q_all[:, h * D_K:(h + 1) * D_K]                      # (Sq, dk)
        kT_h = kT[h * D_K:(h + 1) * D_K, :]                         # (dk, Sk)
        scores = jnp.dot(q_h, kT_h, preferred_element_type=jnp.float32)  # (Sq, Sk)
        scores = jnp.where(mask > 0.5, -1e9, scores)

        # numerically-stable softmax over keys; divide goes to the EUP.
        scores = scores - jnp.max(scores, axis=-1, keepdims=True)
        e = jnp.exp(scores)
        inv = pl.reciprocal(jnp.sum(e, axis=-1, keepdims=True), approx=True)
        attn_h = e * inv                                            # (Sq, Sk)
        attn_cols.append(attn_h)

        v_h = v_all[:, h * D_V:(h + 1) * D_V]                       # (Sk, dv)
        ctx_cols.append(jnp.dot(attn_h, v_h, preferred_element_type=jnp.float32))

    ctx  = jnp.concatenate(ctx_cols, axis=-1)                       # (Sq, H*dv)
    attn = jnp.concatenate(attn_cols, axis=-1)                      # (Sq, H*Sk)

    out = jnp.dot(ctx, wo, preferred_element_type=jnp.float32) + x_q
    return _layer_norm(out), attn


def decoder_layer_kernel(dec_ref, enc_ref, self_mask_ref, cross_mask_ref,
                         sa_wq_ref, sa_wk_ref, sa_wv_ref, sa_wo_ref,
                         ca_wq_ref, ca_wk_ref, ca_wv_ref, ca_wo_ref,
                         ffn_w1_ref, ffn_w2_ref,
                         out_ref, self_attn_ref, cross_attn_ref):
    x   = dec_ref[0]            # (S_dec, D)
    enc = enc_ref[0]            # (S_enc, D)

    # 1) masked self-attention + residual + LN
    h1, a1 = _attention_block(x, x, x, self_mask_ref[0],
                              sa_wq_ref[...], sa_wk_ref[...],
                              sa_wv_ref[...], sa_wo_ref[...])
    self_attn_ref[0] = a1       # single lane-dense (Sq, H*Sk) store

    # 2) encoder-decoder cross-attention + residual + LN
    h2, a2 = _attention_block(h1, enc, enc, cross_mask_ref[0],
                              ca_wq_ref[...], ca_wk_ref[...],
                              ca_wv_ref[...], ca_wo_ref[...])
    cross_attn_ref[0] = a2

    # 3) position-wise FFN (Linear -> ReLU -> Linear) + residual + LN
    hid = jnp.maximum(
        jnp.dot(h2, ffn_w1_ref[...], preferred_element_type=jnp.float32), 0.0)
    y = jnp.dot(hid, ffn_w2_ref[...], preferred_element_type=jnp.float32) + h2
    out_ref[0] = _layer_norm(y)


# ---------------------------------------------------------------------------
# Wrapper
# ---------------------------------------------------------------------------
def decoder_layer(dec_inputs, enc_outputs, dec_self_attn_mask, dec_enc_attn_mask,
                  params):
    p = params
    B, Sq, _ = dec_inputs.shape
    Sk_self  = dec_self_attn_mask.shape[-1]
    Sk_cross = enc_outputs.shape[1]

    # Fold the 1/sqrt(d_k) attention scale into Wq at trace time (zero kernel cost).
    sa_wq = p["sa_wq"] * SCALE
    ca_wq = p["ca_wq"] * SCALE

    full2d = lambda shape: pl.BlockSpec(shape, lambda b: (0, 0))

    grid_spec = pltpu.PrefetchScalarGridSpec(
        num_scalar_prefetch=0, grid=(B,),
        in_specs=[
            pl.BlockSpec((1, Sq, D_MODEL),       lambda b: (b, 0, 0)),   # dec_inputs
            pl.BlockSpec((1, Sk_cross, D_MODEL), lambda b: (b, 0, 0)),   # enc_outputs
            pl.BlockSpec((1, Sq, Sk_self),       lambda b: (b, 0, 0)),   # self mask
            pl.BlockSpec((1, Sq, Sk_cross),      lambda b: (b, 0, 0)),   # cross mask
            full2d((D_MODEL, N_HEADS * D_K)),                            # sa_wq
            full2d((D_MODEL, N_HEADS * D_K)),                            # sa_wk
            full2d((D_MODEL, N_HEADS * D_V)),                            # sa_wv
            full2d((N_HEADS * D_V, D_MODEL)),                            # sa_wo
            full2d((D_MODEL, N_HEADS * D_K)),                            # ca_wq
            full2d((D_MODEL, N_HEADS * D_K)),                            # ca_wk
            full2d((D_MODEL, N_HEADS * D_V)),                            # ca_wv
            full2d((N_HEADS * D_V, D_MODEL)),                            # ca_wo
            full2d((D_MODEL, D_FF)),                                     # ffn_w1
            full2d((D_FF, D_MODEL)),                                     # ffn_w2
        ],
        out_specs=[
            pl.BlockSpec((1, Sq, D_MODEL),            lambda b: (b, 0, 0)),
            pl.BlockSpec((1, Sq, N_HEADS * Sk_self),  lambda b: (b, 0, 0)),
            pl.BlockSpec((1, Sq, N_HEADS * Sk_cross), lambda b: (b, 0, 0)),
        ],
    )
    out_shape = (
        jax.ShapeDtypeStruct((B, Sq, D_MODEL), jnp.float32),
        jax.ShapeDtypeStruct((B, Sq, N_HEADS * Sk_self),  jnp.float32),
        jax.ShapeDtypeStruct((B, Sq, N_HEADS * Sk_cross), jnp.float32),
    )

    dec_out, sa_packed, ca_packed = pl.pallas_call(
        decoder_layer_kernel, out_shape=out_shape, grid_spec=grid_spec,
        compiler_params=pltpu.CompilerParams(
            # B=2 parallel steps: both TensorCores on v7x, negligible overhead
            # elsewhere since each step now covers the whole fused layer.
            dimension_semantics=("parallel",)),
    )(dec_inputs, enc_outputs, dec_self_attn_mask, dec_enc_attn_mask,
      sa_wq, p["sa_wk"], p["sa_wv"], p["sa_wo"],
      ca_wq, p["ca_wk"], p["ca_wv"], p["ca_wo"],
      p["ffn_w1"], p["ffn_w2"])

    # Unpack lane-dense (B, Sq, H*Sk) attention maps to PyTorch layout (B, H, Sq, Sk).
    dec_self_attn = sa_packed.reshape(B, Sq, N_HEADS, Sk_self).transpose(0, 2, 1, 3)
    dec_enc_attn  = ca_packed.reshape(B, Sq, N_HEADS, Sk_cross).transpose(0, 2, 1, 3)
    return dec_out, dec_self_attn, dec_enc_attn


# ---------------------------------------------------------------------------
# Pure-JAX reference (for correctness check)
# ---------------------------------------------------------------------------
def _ref_mha(xq, xk, xv, mask, wq, wk, wv, wo):
    B, Sq, _ = xq.shape
    Sk = xk.shape[1]
    Q = (xq @ wq).reshape(B, Sq, N_HEADS, D_K).transpose(0, 2, 1, 3)
    K = (xk @ wk).reshape(B, Sk, N_HEADS, D_K).transpose(0, 2, 1, 3)
    V = (xv @ wv).reshape(B, Sk, N_HEADS, D_V).transpose(0, 2, 1, 3)
    scores = jnp.einsum('bhqd,bhkd->bhqk', Q, K) / math.sqrt(D_K)
    scores = jnp.where(mask[:, None] > 0.5, -1e9, scores)
    attn = jax.nn.softmax(scores, axis=-1)
    ctx = jnp.einsum('bhqk,bhkd->bhqd', attn, V)
    ctx = ctx.transpose(0, 2, 1, 3).reshape(B, Sq, N_HEADS * D_V)
    return _layer_norm(ctx @ wo + xq), attn


def _ref_decoder_layer(dec_inputs, enc_outputs, m_self, m_cross, p):
    out, a1 = _ref_mha(dec_inputs, dec_inputs, dec_inputs, m_self,
                       p["sa_wq"], p["sa_wk"], p["sa_wv"], p["sa_wo"])
    out, a2 = _ref_mha(out, enc_outputs, enc_outputs, m_cross,
                       p["ca_wq"], p["ca_wk"], p["ca_wv"], p["ca_wo"])
    h = jnp.maximum(out @ p["ffn_w1"], 0.0)
    out = _layer_norm(h @ p["ffn_w2"] + out)
    return out, a1, a2


# ---------------------------------------------------------------------------
if __name__ == "__main__":
    key = jax.random.PRNGKey(0)
    ks = jax.random.split(key, 16)

    B, S_DEC, S_ENC = 2, 8, 8

    def init(k, shape, scale=0.05):
        return (scale * jax.random.normal(k, shape)).astype(jnp.float32)

    params = {
        "sa_wq": init(ks[0], (D_MODEL, N_HEADS * D_K)),
        "sa_wk": init(ks[1], (D_MODEL, N_HEADS * D_K)),
        "sa_wv": init(ks[2], (D_MODEL, N_HEADS * D_V)),
        "sa_wo": init(ks[3], (N_HEADS * D_V, D_MODEL)),
        "ca_wq": init(ks[4], (D_MODEL, N_HEADS * D_K)),
        "ca_wk": init(ks[5], (D_MODEL, N_HEADS * D_K)),
        "ca_wv": init(ks[6], (D_MODEL, N_HEADS * D_V)),
        "ca_wo": init(ks[7], (N_HEADS * D_V, D_MODEL)),
        "ffn_w1": init(ks[8], (D_MODEL, D_FF)),
        "ffn_w2": init(ks[9], (D_FF, D_MODEL)),
    }

    dec_inputs  = init(ks[10], (B, S_DEC, D_MODEL), scale=1.0)
    enc_outputs = init(ks[11], (B, S_ENC, D_MODEL), scale=1.0)

    # self-attn mask: causal (subsequent) mask, 1.0 = masked
    causal = jnp.triu(jnp.ones((S_DEC, S_DEC), jnp.float32), k=1)
    dec_self_attn_mask = jnp.broadcast_to(causal, (B, S_DEC, S_DEC))
    # enc-dec mask: no padding in this synthetic example
    dec_enc_attn_mask = jnp.zeros((B, S_DEC, S_ENC), jnp.float32)

    out, self_attn, enc_attn = decoder_layer(
        dec_inputs, enc_outputs, dec_self_attn_mask, dec_enc_attn_mask, params)
    out = jax.block_until_ready(out)
    self_attn = jax.block_until_ready(self_attn)
    enc_attn = jax.block_until_ready(enc_attn)

    # Correctness check vs. pure-JAX reference.
    # Tolerance accounts for the EUP approximate reciprocal in the softmax.
    r_out, r_sa, r_ea = _ref_decoder_layer(
        dec_inputs, enc_outputs, dec_self_attn_mask, dec_enc_attn_mask, params)
    assert jnp.allclose(out, r_out, atol=5e-3, rtol=5e-3)
    assert jnp.allclose(self_attn, r_sa, atol=5e-3, rtol=5e-3)
    assert jnp.allclose(enc_attn, r_ea, atol=5e-3, rtol=5e-3)

    print("KERNEL_OK")
</pallas_src>

<mosaic_0001>
module attributes {stable_mosaic.version = 11 : i64} {
  func.func @decoder_layer_kernel(%arg0: i32, %arg1: memref<1x8x32xf32, #tpu.memory_space<vmem>>, %arg2: memref<1x8x32xf32, #tpu.memory_space<vmem>>, %arg3: memref<1x8x8xf32, #tpu.memory_space<vmem>>, %arg4: memref<1x8x8xf32, #tpu.memory_space<vmem>>, %arg5: memref<32x32xf32, #tpu.memory_space<vmem>>, %arg6: memref<32x32xf32, #tpu.memory_space<vmem>>, %arg7: memref<32x32xf32, #tpu.memory_space<vmem>>, %arg8: memref<32x32xf32, #tpu.memory_space<vmem>>, %arg9: memref<32x32xf32, #tpu.memory_space<vmem>>, %arg10: memref<32x32xf32, #tpu.memory_space<vmem>>, %arg11: memref<32x32xf32, #tpu.memory_space<vmem>>, %arg12: memref<32x32xf32, #tpu.memory_space<vmem>>, %arg13: memref<32x64xf32, #tpu.memory_space<vmem>>, %arg14: memref<64x32xf32, #tpu.memory_space<vmem>>, %arg15: memref<1x8x32xf32, #tpu.memory_space<vmem>>, %arg16: memref<1x8x32xf32, #tpu.memory_space<vmem>>, %arg17: memref<1x8x32xf32, #tpu.memory_space<vmem>>) attributes {dimension_semantics = [#tpu.dimension_semantics<parallel>], iteration_bounds = array<i64: 2>, scalar_prefetch = 0 : i64, scratch_operands = 0 : i64, tpu.core_type = #tpu.core_type<tc>, window_params = [{transform_indices = @transform_0, window_bounds = array<i64: 1, 8, 32>}, {transform_indices = @transform_1, window_bounds = array<i64: 1, 8, 32>}, {transform_indices = @transform_2, window_bounds = array<i64: 1, 8, 8>}, {transform_indices = @transform_3, window_bounds = array<i64: 1, 8, 8>}, {pipeline_mode = #tpu.pipeline_mode<synchronous>, transform_indices = @transform_4, window_bounds = array<i64: 32, 32>}, {pipeline_mode = #tpu.pipeline_mode<synchronous>, transform_indices = @transform_5, window_bounds = array<i64: 32, 32>}, {pipeline_mode = #tpu.pipeline_mode<synchronous>, transform_indices = @transform_6, window_bounds = array<i64: 32, 32>}, {pipeline_mode = #tpu.pipeline_mode<synchronous>, transform_indices = @transform_7, window_bounds = array<i64: 32, 32>}, {pipeline_mode = #tpu.pipeline_mode<synchronous>, transform_indices = @transform_8, window_bounds = array<i64: 32, 32>}, {pipeline_mode = #tpu.pipeline_mode<synchronous>, transform_indices = @transform_9, window_bounds = array<i64: 32, 32>}, {pipeline_mode = #tpu.pipeline_mode<synchronous>, transform_indices = @transform_10, window_bounds = array<i64: 32, 32>}, {pipeline_mode = #tpu.pipeline_mode<synchronous>, transform_indices = @transform_11, window_bounds = array<i64: 32, 32>}, {pipeline_mode = #tpu.pipeline_mode<synchronous>, transform_indices = @transform_12, window_bounds = array<i64: 32, 64>}, {pipeline_mode = #tpu.pipeline_mode<synchronous>, transform_indices = @transform_13, window_bounds = array<i64: 64, 32>}, {transform_indices = @transform_14, window_bounds = array<i64: 1, 8, 32>}, {transform_indices = @transform_15, window_bounds = array<i64: 1, 8, 32>}, {transform_indices = @transform_16, window_bounds = array<i64: 1, 8, 32>}]} {
    %c0 = arith.constant 0 : index
    %c0_0 = arith.constant 0 : index
    %c0_1 = arith.constant 0 : index
    %0 = vector.load %arg1[%c0, %c0_0, %c0_1] : memref<1x8x32xf32, #tpu.memory_space<vmem>>, vector<1x8x32xf32>
    %1 = vector.shape_cast %0 : vector<1x8x32xf32> to vector<8x32xf32>
    %c0_2 = arith.constant 0 : index
    %c0_3 = arith.constant 0 : index
    %c0_4 = arith.constant 0 : index
    %2 = vector.load %arg2[%c0_2, %c0_3, %c0_4] : memref<1x8x32xf32, #tpu.memory_space<vmem>>, vector<1x8x32xf32>
    %3 = vector.shape_cast %2 : vector<1x8x32xf32> to vector<8x32xf32>
    %c0_5 = arith.constant 0 : index
    %c0_6 = arith.constant 0 : index
    %c0_7 = arith.constant 0 : index
    %4 = vector.load %arg3[%c0_5, %c0_6, %c0_7] : memref<1x8x8xf32, #tpu.memory_space<vmem>>, vector<1x8x8xf32>
    %5 = vector.shape_cast %4 : vector<1x8x8xf32> to vector<8x8xf32>
    %c0_8 = arith.constant 0 : index
    %c0_9 = arith.constant 0 : index
    %6 = vector.load %arg5[%c0_8, %c0_9] : memref<32x32xf32, #tpu.memory_space<vmem>>, vector<32x32xf32>
    %c0_10 = arith.constant 0 : index
    %c0_11 = arith.constant 0 : index
    %7 = vector.load %arg6[%c0_10, %c0_11] : memref<32x32xf32, #tpu.memory_space<vmem>>, vector<32x32xf32>
    %c0_12 = arith.constant 0 : index
    %c0_13 = arith.constant 0 : index
    %8 = vector.load %arg7[%c0_12, %c0_13] : memref<32x32xf32, #tpu.memory_space<vmem>>, vector<32x32xf32>
    %c0_14 = arith.constant 0 : index
    %c0_15 = arith.constant 0 : index
    %9 = vector.load %arg8[%c0_14, %c0_15] : memref<32x32xf32, #tpu.memory_space<vmem>>, vector<32x32xf32>
    %cst = arith.constant dense<0.000000e+00> : vector<8x32xf32>
    %10 = tpu.matmul %1, %6, %cst {dimension_numbers = #tpu.dot_dimension_numbers<[1], [0], [0], [1], [0, 0, 1, 1], [], []>} : vector<8x32xf32>, vector<32x32xf32>, vector<8x32xf32> -> vector<8x32xf32>
    %cst_16 = arith.constant dense<0.000000e+00> : vector<8x32xf32>
    %11 = tpu.matmul %1, %7, %cst_16 {dimension_numbers = #tpu.dot_dimension_numbers<[1], [0], [0], [1], [0, 0, 1, 1], [], []>} : vector<8x32xf32>, vector<32x32xf32>, vector<8x32xf32> -> vector<8x32xf32>
    %cst_17 = arith.constant dense<0.000000e+00> : vector<8x32xf32>
    %12 = tpu.matmul %1, %8, %cst_17 {dimension_numbers = #tpu.dot_dimension_numbers<[1], [0], [0], [1], [0, 0, 1, 1], [], []>} : vector<8x32xf32>, vector<32x32xf32>, vector<8x32xf32> -> vector<8x32xf32>
    %13 = tpu.transpose %11, [1, 0] : vector<8x32xf32> -> vector<32x8xf32>
    %14 = vector.extract_strided_slice %10 {offsets = [0, 0], sizes = [8, 8], strides = [1, 1]} : vector<8x32xf32> to vector<8x8xf32>
    %15 = vector.extract_strided_slice %13 {offsets = [0, 0], sizes = [8, 8], strides = [1, 1]} : vector<32x8xf32> to vector<8x8xf32>
    %cst_18 = arith.constant dense<0.000000e+00> : vector<8x8xf32>
    %16 = tpu.matmul %14, %15, %cst_18 {dimension_numbers = #tpu.dot_dimension_numbers<[1], [0], [0], [1], [0, 0, 1, 1], [], []>} : vector<8x8xf32>, vector<8x8xf32>, vector<8x8xf32> -> vector<8x8xf32>
    %cst_19 = arith.constant 5.000000e-01 : f32
    %17 = vector.broadcast %cst_19 : f32 to vector<8x8xf32>
    %18 = arith.cmpf ogt, %5, %17 : vector<8x8xf32>
    %cst_20 = arith.constant -1.000000e+09 : f32
    %19 = vector.broadcast %cst_20 : f32 to vector<8x8xf32>
    %20 = arith.select %18, %19, %16 : vector<8x8xi1>, vector<8x8xf32>
    %cst_21 = arith.constant dense<0xFF800000> : vector<8xf32>
    %21 = vector.multi_reduction <maximumf>, %20, %cst_21 [1] : vector<8x8xf32> to vector<8xf32>
    %22 = vector.shape_cast %21 : vector<8xf32> to vector<8x1xf32>
    %23 = vector.broadcast %22 : vector<8x1xf32> to vector<8x8xf32>
    %24 = arith.subf %20, %23 : vector<8x8xf32>
    %25 = math.exp %24 : vector<8x8xf32>
    %cst_22 = arith.constant dense<0.000000e+00> : vector<8xf32>
    %26 = vector.multi_reduction <add>, %25, %cst_22 [1] : vector<8x8xf32> to vector<8xf32>
    %27 = vector.shape_cast %26 : vector<8xf32> to vector<8x1xf32>
    %28 = tpu.reciprocal %27 {approx = true} : vector<8x1xf32> -> vector<8x1xf32>
    %29 = vector.broadcast %28 : vector<8x1xf32> to vector<8x8xf32>
    %30 = arith.mulf %25, %29 : vector<8x8xf32>
    %31 = vector.extract_strided_slice %12 {offsets = [0, 0], sizes = [8, 8], strides = [1, 1]} : vector<8x32xf32> to vector<8x8xf32>
    %cst_23 = arith.constant dense<0.000000e+00> : vector<8x8xf32>
    %32 = tpu.matmul %30, %31, %cst_23 {dimension_numbers = #tpu.dot_dimension_numbers<[1], [0], [0], [1], [0, 0, 1, 1], [], []>} : vector<8x8xf32>, vector<8x8xf32>, vector<8x8xf32> -> vector<8x8xf32>
    %33 = vector.extract_strided_slice %10 {offsets = [0, 8], sizes = [8, 8], strides = [1, 1]} : vector<8x32xf32> to vector<8x8xf32>
    %34 = vector.extract_strided_slice %13 {offsets = [8, 0], sizes = [8, 8], strides = [1, 1]} : vector<32x8xf32> to vector<8x8xf32>
    %cst_24 = arith.constant dense<0.000000e+00> : vector<8x8xf32>
    %35 = tpu.matmul %33, %34, %cst_24 {dimension_numbers = #tpu.dot_dimension_numbers<[1], [0], [0], [1], [0, 0, 1, 1], [], []>} : vector<8x8xf32>, vector<8x8xf32>, vector<8x8xf32> -> vector<8x8xf32>
    %cst_25 = arith.constant 5.000000e-01 : f32
    %36 = vector.broadcast %cst_25 : f32 to vector<8x8xf32>
    %37 = arith.cmpf ogt, %5, %36 : vector<8x8xf32>
    %cst_26 = arith.constant -1.000000e+09 : f32
    %38 = vector.broadcast %cst_26 : f32 to vector<8x8xf32>
    %39 = arith.select %37, %38, %35 : vector<8x8xi1>, vector<8x8xf32>
    %cst_27 = arith.constant dense<0xFF800000> : vector<8xf32>
    %40 = vector.multi_reduction <maximumf>, %39, %cst_27 [1] : vector<8x8xf32> to vector<8xf32>
    %41 = vector.shape_cast %40 : vector<8xf32> to vector<8x1xf32>
    %42 = vector.broadcast %41 : vector<8x1xf32> to vector<8x8xf32>
    %43 = arith.subf %39, %42 : vector<8x8xf32>
    %44 = math.exp %43 : vector<8x8xf32>
    %cst_28 = arith.constant dense<0.000000e+00> : vector<8xf32>
    %45 = vector.multi_reduction <add>, %44, %cst_28 [1] : vector<8x8xf32> to vector<8xf32>
    %46 = vector.shape_cast %45 : vector<8xf32> to vector<8x1xf32>
    %47 = tpu.reciprocal %46 {approx = true} : vector<8x1xf32> -> vector<8x1xf32>
    %48 = vector.broadcast %47 : vector<8x1xf32> to vector<8x8xf32>
    %49 = arith.mulf %44, %48 : vector<8x8xf32>
    %50 = vector.extract_strided_slice %12 {offsets = [0, 8], sizes = [8, 8], strides = [1, 1]} : vector<8x32xf32> to vector<8x8xf32>
    %cst_29 = arith.constant dense<0.000000e+00> : vector<8x8xf32>
    %51 = tpu.matmul %49, %50, %cst_29 {dimension_numbers = #tpu.dot_dimension_numbers<[1], [0], [0], [1], [0, 0, 1, 1], [], []>} : vector<8x8xf32>, vector<8x8xf32>, vector<8x8xf32> -> vector<8x8xf32>
    %52 = vector.extract_strided_slice %10 {offsets = [0, 16], sizes = [8, 8], strides = [1, 1]} : vector<8x32xf32> to vector<8x8xf32>
    %53 = vector.extract_strided_slice %13 {offsets = [16, 0], sizes = [8, 8], strides = [1, 1]} : vector<32x8xf32> to vector<8x8xf32>
    %cst_30 = arith.constant dense<0.000000e+00> : vector<8x8xf32>
    %54 = tpu.matmul %52, %53, %cst_30 {dimension_numbers = #tpu.dot_dimension_numbers<[1], [0], [0], [1], [0, 0, 1, 1], [], []>} : vector<8x8xf32>, vector<8x8xf32>, vector<8x8xf32> -> vector<8x8xf32>
    %cst_31 = arith.constant 5.000000e-01 : f32
    %55 = vector.broadcast %cst_31 : f32 to vector<8x8xf32>
    %56 = arith.cmpf ogt, %5, %55 : vector<8x8xf32>
    %cst_32 = arith.constant -1.000000e+09 : f32
    %57 = vector.broadcast %cst_32 : f32 to vector<8x8xf32>
    %58 = arith.select %56, %57, %54 : vector<8x8xi1>, vector<8x8xf32>
    %cst_33 = arith.constant dense<0xFF800000> : vector<8xf32>
    %59 = vector.multi_reduction <maximumf>, %58, %cst_33 [1] : vector<8x8xf32> to vector<8xf32>
    %60 = vector.shape_cast %59 : vector<8xf32> to vector<8x1xf32>
    %61 = vector.broadcast %60 : vector<8x1xf32> to vector<8x8xf32>
    %62 = arith.subf %58, %61 : vector<8x8xf32>
    %63 = math.exp %62 : vector<8x8xf32>
    %cst_34 = arith.constant dense<0.000000e+00> : vector<8xf32>
    %64 = vector.multi_reduction <add>, %63, %cst_34 [1] : vector<8x8xf32> to vector<8xf32>
    %65 = vector.shape_cast %64 : vector<8xf32> to vector<8x1xf32>
    %66 = tpu.reciprocal %65 {approx = true} : vector<8x1xf32> -> vector<8x1xf32>
    %67 = vector.broadcast %66 : vector<8x1xf32> to vector<8x8xf32>
    %68 = arith.mulf %63, %67 : vector<8x8xf32>
    %69 = vector.extract_strided_slice %12 {offsets = [0, 16], sizes = [8, 8], strides = [1, 1]} : vector<8x32xf32> to vector<8x8xf32>
    %cst_35 = arith.constant dense<0.000000e+00> : vector<8x8xf32>
    %70 = tpu.matmul %68, %69, %cst_35 {dimension_numbers = #tpu.dot_dimension_numbers<[1], [0], [0], [1], [0, 0, 1, 1], [], []>} : vector<8x8xf32>, vector<8x8xf32>, vector<8x8xf32> -> vector<8x8xf32>
    %71 = vector.extract_strided_slice %10 {offsets = [0, 24], sizes = [8, 8], strides = [1, 1]} : vector<8x32xf32> to vector<8x8xf32>
    %72 = vector.extract_strided_slice %13 {offsets = [24, 0], sizes = [8, 8], strides = [1, 1]} : vector<32x8xf32> to vector<8x8xf32>
    %cst_36 = arith.constant dense<0.000000e+00> : vector<8x8xf32>
    %73 = tpu.matmul %71, %72, %cst_36 {dimension_numbers = #tpu.dot_dimension_numbers<[1], [0], [0], [1], [0, 0, 1, 1], [], []>} : vector<8x8xf32>, vector<8x8xf32>, vector<8x8xf32> -> vector<8x8xf32>
    %cst_37 = arith.constant 5.000000e-01 : f32
    %74 = vector.broadcast %cst_37 : f32 to vector<8x8xf32>
    %75 = arith.cmpf ogt, %5, %74 : vector<8x8xf32>
    %cst_38 = arith.constant -1.000000e+09 : f32
    %76 = vector.broadcast %cst_38 : f32 to vector<8x8xf32>
    %77 = arith.select %75, %76, %73 : vector<8x8xi1>, vector<8x8xf32>
    %cst_39 = arith.constant dense<0xFF800000> : vector<8xf32>
    %78 = vector.multi_reduction <maximumf>, %77, %cst_39 [1] : vector<8x8xf32> to vector<8xf32>
    %79 = vector.shape_cast %78 : vector<8xf32> to vector<8x1xf32>
    %80 = vector.broadcast %79 : vector<8x1xf32> to vector<8x8xf32>
    %81 = arith.subf %77, %80 : vector<8x8xf32>
    %82 = math.exp %81 : vector<8x8xf32>
    %cst_40 = arith.constant dense<0.000000e+00> : vector<8xf32>
    %83 = vector.multi_reduction <add>, %82, %cst_40 [1] : vector<8x8xf32> to vector<8xf32>
    %84 = vector.shape_cast %83 : vector<8xf32> to vector<8x1xf32>
    %85 = tpu.reciprocal %84 {approx = true} : vector<8x1xf32> -> vector<8x1xf32>
    %86 = vector.broadcast %85 : vector<8x1xf32> to vector<8x8xf32>
    %87 = arith.mulf %82, %86 : vector<8x8xf32>
    %88 = vector.extract_strided_slice %12 {offsets = [0, 24], sizes = [8, 8], strides = [1, 1]} : vector<8x32xf32> to vector<8x8xf32>
    %cst_41 = arith.constant dense<0.000000e+00> : vector<8x8xf32>
    %89 = tpu.matmul %87, %88, %cst_41 {dimension_numbers = #tpu.dot_dimension_numbers<[1], [0], [0], [1], [0, 0, 1, 1], [], []>} : vector<8x8xf32>, vector<8x8xf32>, vector<8x8xf32> -> vector<8x8xf32>
    %90 = tpu.concatenate %32, %51, %70, %89 in 1 : vector<8x8xf32>, vector<8x8xf32>, vector<8x8xf32>, vector<8x8xf32> -> vector<8x32xf32>
    %91 = tpu.concatenate %30, %49, %68, %87 in 1 : vector<8x8xf32>, vector<8x8xf32>, vector<8x8xf32>, vector<8x8xf32> -> vector<8x32xf32>
    %cst_42 = arith.constant dense<0.000000e+00> : vector<8x32xf32>
    %92 = tpu.matmul %90, %9, %cst_42 {dimension_numbers = #tpu.dot_dimension_numbers<[1], [0], [0], [1], [0, 0, 1, 1], [], []>} : vector<8x32xf32>, vector<32x32xf32>, vector<8x32xf32> -> vector<8x32xf32>
    %93 = arith.addf %92, %1 : vector<8x32xf32>
    %cst_43 = arith.constant dense<0.000000e+00> : vector<8xf32>
    %94 = vector.multi_reduction <add>, %93, %cst_43 [1] : vector<8x32xf32> to vector<8xf32>
    %95 = vector.shape_cast %94 : vector<8xf32> to vector<8x1xf32>
    %cst_44 = arith.constant 3.200000e+01 : f32
    %96 = vector.broadcast %cst_44 : f32 to vector<8x1xf32>
    %97 = arith.divf %95, %96 : vector<8x1xf32>
    %98 = vector.broadcast %97 : vector<8x1xf32> to vector<8x32xf32>
    %99 = arith.subf %93, %98 : vector<8x32xf32>
    %100 = arith.mulf %99, %99 : vector<8x32xf32>
    %cst_45 = arith.constant dense<0.000000e+00> : vector<8xf32>
    %101 = vector.multi_reduction <add>, %100, %cst_45 [1] : vector<8x32xf32> to vector<8xf32>
    %102 = vector.shape_cast %101 : vector<8xf32> to vector<8x1xf32>
    %cst_46 = arith.constant 3.200000e+01 : f32
    %103 = vector.broadcast %cst_46 : f32 to vector<8x1xf32>
    %104 = arith.divf %102, %103 : vector<8x1xf32>
    %105 = vector.broadcast %97 : vector<8x1xf32> to vector<8x32xf32>
    %106 = arith.subf %93, %105 : vector<8x32xf32>
    %cst_47 = arith.constant 9.99999974E-6 : f32
    %107 = vector.broadcast %cst_47 : f32 to vector<8x1xf32>
    %108 = arith.addf %104, %107 : vector<8x1xf32>
    %109 = math.rsqrt %108 : vector<8x1xf32>
    %110 = vector.broadcast %109 : vector<8x1xf32> to vector<8x32xf32>
    %111 = arith.mulf %106, %110 : vector<8x32xf32>
    %c0_48 = arith.constant 0 : index
    %c0_49 = arith.constant 0 : index
    %c0_50 = arith.constant 0 : index
    %112 = vector.load %arg16[%c0_48, %c0_49, %c0_50] : memref<1x8x32xf32, #tpu.memory_space<vmem>>, vector<1x8x32xf32>
    %113 = vector.shape_cast %112 : vector<1x8x32xf32> to vector<8x32xf32>
    %114 = vector.shape_cast %91 : vector<8x32xf32> to vector<1x8x32xf32>
    tpu.vector_store %arg16[%c0_48, %c0_49, %c0_50], %114 {strides = array<i32>} : memref<1x8x32xf32, #tpu.memory_space<vmem>>, vector<1x8x32xf32>,
    %c0_51 = arith.constant 0 : index
    %c0_52 = arith.constant 0 : index
    %c0_53 = arith.constant 0 : index
    %115 = vector.load %arg4[%c0_51, %c0_52, %c0_53] : memref<1x8x8xf32, #tpu.memory_space<vmem>>, vector<1x8x8xf32>
    %116 = vector.shape_cast %115 : vector<1x8x8xf32> to vector<8x8xf32>
    %c0_54 = arith.constant 0 : index
    %c0_55 = arith.constant 0 : index
    %117 = vector.load %arg9[%c0_54, %c0_55] : memref<32x32xf32, #tpu.memory_space<vmem>>, vector<32x32xf32>
    %c0_56 = arith.constant 0 : index
    %c0_57 = arith.constant 0 : index
    %118 = vector.load %arg10[%c0_56, %c0_57] : memref<32x32xf32, #tpu.memory_space<vmem>>, vector<32x32xf32>
    %c0_58 = arith.constant 0 : index
    %c0_59 = arith.constant 0 : index
    %119 = vector.load %arg11[%c0_58, %c0_59] : memref<32x32xf32, #tpu.memory_space<vmem>>, vector<32x32xf32>
    %c0_60 = arith.constant 0 : index
    %c0_61 = arith.constant 0 : index
    %120 = vector.load %arg12[%c0_60, %c0_61] : memref<32x32xf32, #tpu.memory_space<vmem>>, vector<32x32xf32>
    %cst_62 = arith.constant dense<0.000000e+00> : vector<8x32xf32>
    %121 = tpu.matmul %111, %117, %cst_62 {dimension_numbers = #tpu.dot_dimension_numbers<[1], [0], [0], [1], [0, 0, 1, 1], [], []>} : vector<8x32xf32>, vector<32x32xf32>, vector<8x32xf32> -> vector<8x32xf32>
    %cst_63 = arith.constant dense<0.000000e+00> : vector<8x32xf32>
    %122 = tpu.matmul %3, %118, %cst_63 {dimension_numbers = #tpu.dot_dimension_numbers<[1], [0], [0], [1], [0, 0, 1, 1], [], []>} : vector<8x32xf32>, vector<32x32xf32>, vector<8x32xf32> -> vector<8x32xf32>
    %cst_64 = arith.constant dense<0.000000e+00> : vector<8x32xf32>
    %123 = tpu.matmul %3, %119, %cst_64 {dimension_numbers = #tpu.dot_dimension_numbers<[1], [0], [0], [1], [0, 0, 1, 1], [], []>} : vector<8x32xf32>, vector<32x32xf32>, vector<8x32xf32> -> vector<8x32xf32>
    %124 = tpu.transpose %122, [1, 0] : vector<8x32xf32> -> vector<32x8xf32>
    %125 = vector.extract_strided_slice %121 {offsets = [0, 0], sizes = [8, 8], strides = [1, 1]} : vector<8x32xf32> to vector<8x8xf32>
    %126 = vector.extract_strided_slice %124 {offsets = [0, 0], sizes = [8, 8], strides = [1, 1]} : vector<32x8xf32> to vector<8x8xf32>
    %cst_65 = arith.constant dense<0.000000e+00> : vector<8x8xf32>
    %127 = tpu.matmul %125, %126, %cst_65 {dimension_numbers = #tpu.dot_dimension_numbers<[1], [0], [0], [1], [0, 0, 1, 1], [], []>} : vector<8x8xf32>, vector<8x8xf32>, vector<8x8xf32> -> vector<8x8xf32>
    %cst_66 = arith.constant 5.000000e-01 : f32
    %128 = vector.broadcast %cst_66 : f32 to vector<8x8xf32>
    %129 = arith.cmpf ogt, %116, %128 : vector<8x8xf32>
    %cst_67 = arith.constant -1.000000e+09 : f32
    %130 = vector.broadcast %cst_67 : f32 to vector<8x8xf32>
    %131 = arith.select %129, %130, %127 : vector<8x8xi1>, vector<8x8xf32>
    %cst_68 = arith.constant dense<0xFF800000> : vector<8xf32>
    %132 = vector.multi_reduction <maximumf>, %131, %cst_68 [1] : vector<8x8xf32> to vector<8xf32>
    %133 = vector.shape_cast %132 : vector<8xf32> to vector<8x1xf32>
    %134 = vector.broadcast %133 : vector<8x1xf32> to vector<8x8xf32>
    %135 = arith.subf %131, %134 : vector<8x8xf32>
    %136 = math.exp %135 : vector<8x8xf32>
    %cst_69 = arith.constant dense<0.000000e+00> : vector<8xf32>
    %137 = vector.multi_reduction <add>, %136, %cst_69 [1] : vector<8x8xf32> to vector<8xf32>
    %138 = vector.shape_cast %137 : vector<8xf32> to vector<8x1xf32>
    %139 = tpu.reciprocal %138 {approx = true} : vector<8x1xf32> -> vector<8x1xf32>
    %140 = vector.broadcast %139 : vector<8x1xf32> to vector<8x8xf32>
    %141 = arith.mulf %136, %140 : vector<8x8xf32>
    %142 = vector.extract_strided_slice %123 {offsets = [0, 0], sizes = [8, 8], strides = [1, 1]} : vector<8x32xf32> to vector<8x8xf32>
    %cst_70 = arith.constant dense<0.000000e+00> : vector<8x8xf32>
    %143 = tpu.matmul %141, %142, %cst_70 {dimension_numbers = #tpu.dot_dimension_numbers<[1], [0], [0], [1], [0, 0, 1, 1], [], []>} : vector<8x8xf32>, vector<8x8xf32>, vector<8x8xf32> -> vector<8x8xf32>
    %144 = vector.extract_strided_slice %121 {offsets = [0, 8], sizes = [8, 8], strides = [1, 1]} : vector<8x32xf32> to vector<8x8xf32>
    %145 = vector.extract_strided_slice %124 {offsets = [8, 0], sizes = [8, 8], strides = [1, 1]} : vector<32x8xf32> to vector<8x8xf32>
    %cst_71 = arith.constant dense<0.000000e+00> : vector<8x8xf32>
    %146 = tpu.matmul %144, %145, %cst_71 {dimension_numbers = #tpu.dot_dimension_numbers<[1], [0], [0], [1], [0, 0, 1, 1], [], []>} : vector<8x8xf32>, vector<8x8xf32>, vector<8x8xf32> -> vector<8x8xf32>
    %cst_72 = arith.constant 5.000000e-01 : f32
    %147 = vector.broadcast %cst_72 : f32 to vector<8x8xf32>
    %148 = arith.cmpf ogt, %116, %147 : vector<8x8xf32>
    %cst_73 = arith.constant -1.000000e+09 : f32
    %149 = vector.broadcast %cst_73 : f32 to vector<8x8xf32>
    %150 = arith.select %148, %149, %146 : vector<8x8xi1>, vector<8x8xf32>
    %cst_74 = arith.constant dense<0xFF800000> : vector<8xf32>
    %151 = vector.multi_reduction <maximumf>, %150, %cst_74 [1] : vector<8x8xf32> to vector<8xf32>
    %152 = vector.shape_cast %151 : vector<8xf32> to vector<8x1xf32>
    %153 = vector.broadcast %152 : vector<8x1xf32> to vector<8x8xf32>
    %154 = arith.subf %150, %153 : vector<8x8xf32>
    %155 = math.exp %154 : vector<8x8xf32>
    %cst_75 = arith.constant dense<0.000000e+00> : vector<8xf32>
    %156 = vector.multi_reduction <add>, %155, %cst_75 [1] : vector<8x8xf32> to vector<8xf32>
    %157 = vector.shape_cast %156 : vector<8xf32> to vector<8x1xf32>
    %158 = tpu.reciprocal %157 {approx = true} : vector<8x1xf32> -> vector<8x1xf32>
    %159 = vector.broadcast %158 : vector<8x1xf32> to vector<8x8xf32>
    %160 = arith.mulf %155, %159 : vector<8x8xf32>
    %161 = vector.extract_strided_slice %123 {offsets = [0, 8], sizes = [8, 8], strides = [1, 1]} : vector<8x32xf32> to vector<8x8xf32>
    %cst_76 = arith.constant dense<0.000000e+00> : vector<8x8xf32>
    %162 = tpu.matmul %160, %161, %cst_76 {dimension_numbers = #tpu.dot_dimension_numbers<[1], [0], [0], [1], [0, 0, 1, 1], [], []>} : vector<8x8xf32>, vector<8x8xf32>, vector<8x8xf32> -> vector<8x8xf32>
    %163 = vector.extract_strided_slice %121 {offsets = [0, 16], sizes = [8, 8], strides = [1, 1]} : vector<8x32xf32> to vector<8x8xf32>
    %164 = vector.extract_strided_slice %124 {offsets = [16, 0], sizes = [8, 8], strides = [1, 1]} : vector<32x8xf32> to vector<8x8xf32>
    %cst_77 = arith.constant dense<0.000000e+00> : vector<8x8xf32>
    %165 = tpu.matmul %163, %164, %cst_77 {dimension_numbers = #tpu.dot_dimension_numbers<[1], [0], [0], [1], [0, 0, 1, 1], [], []>} : vector<8x8xf32>, vector<8x8xf32>, vector<8x8xf32> -> vector<8x8xf32>
    %cst_78 = arith.constant 5.000000e-01 : f32
    %166 = vector.broadcast %cst_78 : f32 to vector<8x8xf32>
    %167 = arith.cmpf ogt, %116, %166 : vector<8x8xf32>
    %cst_79 = arith.constant -1.000000e+09 : f32
    %168 = vector.broadcast %cst_79 : f32 to vector<8x8xf32>
    %169 = arith.select %167, %168, %165 : vector<8x8xi1>, vector<8x8xf32>
    %cst_80 = arith.constant dense<0xFF800000> : vector<8xf32>
    %170 = vector.multi_reduction <maximumf>, %169, %cst_80 [1] : vector<8x8xf32> to vector<8xf32>
    %171 = vector.shape_cast %170 : vector<8xf32> to vector<8x1xf32>
    %172 = vector.broadcast %171 : vector<8x1xf32> to vector<8x8xf32>
    %173 = arith.subf %169, %172 : vector<8x8xf32>
    %174 = math.exp %173 : vector<8x8xf32>
    %cst_81 = arith.constant dense<0.000000e+00> : vector<8xf32>
    %175 = vector.multi_reduction <add>, %174, %cst_81 [1] : vector<8x8xf32> to vector<8xf32>
    %176 = vector.shape_cast %175 : vector<8xf32> to vector<8x1xf32>
    %177 = tpu.reciprocal %176 {approx = true} : vector<8x1xf32> -> vector<8x1xf32>
    %178 = vector.broadcast %177 : vector<8x1xf32> to vector<8x8xf32>
    %179 = arith.mulf %174, %178 : vector<8x8xf32>
    %180 = vector.extract_strided_slice %123 {offsets = [0, 16], sizes = [8, 8], strides = [1, 1]} : vector<8x32xf32> to vector<8x8xf32>
    %cst_82 = arith.constant dense<0.000000e+00> : vector<8x8xf32>
    %181 = tpu.matmul %179, %180, %cst_82 {dimension_numbers = #tpu.dot_dimension_numbers<[1], [0], [0], [1], [0, 0, 1, 1], [], []>} : vector<8x8xf32>, vector<8x8xf32>, vector<8x8xf32> -> vector<8x8xf32>
    %182 = vector.extract_strided_slice %121 {offsets = [0, 24], sizes = [8, 8], strides = [1, 1]} : vector<8x32xf32> to vector<8x8xf32>
    %183 = vector.extract_strided_slice %124 {offsets = [24, 0], sizes = [8, 8], strides = [1, 1]} : vector<32x8xf32> to vector<8x8xf32>
    %cst_83 = arith.constant dense<0.000000e+00> : vector<8x8xf32>
    %184 = tpu.matmul %182, %183, %cst_83 {dimension_numbers = #tpu.dot_dimension_numbers<[1], [0], [0], [1], [0, 0, 1, 1], [], []>} : vector<8x8xf32>, vector<8x8xf32>, vector<8x8xf32> -> vector<8x8xf32>
    %cst_84 = arith.constant 5.000000e-01 : f32
    %185 = vector.broadcast %cst_84 : f32 to vector<8x8xf32>
    %186 = arith.cmpf ogt, %116, %185 : vector<8x8xf32>
    %cst_85 = arith.constant -1.000000e+09 : f32
    %187 = vector.broadcast %cst_85 : f32 to vector<8x8xf32>
    %188 = arith.select %186, %187, %184 : vector<8x8xi1>, vector<8x8xf32>
    %cst_86 = arith.constant dense<0xFF800000> : vector<8xf32>
    %189 = vector.multi_reduction <maximumf>, %188, %cst_86 [1] : vector<8x8xf32> to vector<8xf32>
    %190 = vector.shape_cast %189 : vector<8xf32> to vector<8x1xf32>
    %191 = vector.broadcast %190 : vector<8x1xf32> to vector<8x8xf32>
    %192 = arith.subf %188, %191 : vector<8x8xf32>
    %193 = math.exp %192 : vector<8x8xf32>
    %cst_87 = arith.constant dense<0.000000e+00> : vector<8xf32>
    %194 = vector.multi_reduction <add>, %193, %cst_87 [1] : vector<8x8xf32> to vector<8xf32>
    %195 = vector.shape_cast %194 : vector<8xf32> to vector<8x1xf32>
    %196 = tpu.reciprocal %195 {approx = true} : vector<8x1xf32> -> vector<8x1xf32>
    %197 = vector.broadcast %196 : vector<8x1xf32> to vector<8x8xf32>
    %198 = arith.mulf %193, %197 : vector<8x8xf32>
    %199 = vector.extract_strided_slice %123 {offsets = [0, 24], sizes = [8, 8], strides = [1, 1]} : vector<8x32xf32> to vector<8x8xf32>
    %cst_88 = arith.constant dense<0.000000e+00> : vector<8x8xf32>
    %200 = tpu.matmul %198, %199, %cst_88 {dimension_numbers = #tpu.dot_dimension_numbers<[1], [0], [0], [1], [0, 0, 1, 1], [], []>} : vector<8x8xf32>, vector<8x8xf32>, vector<8x8xf32> -> vector<8x8xf32>
    %201 = tpu.concatenate %143, %162, %181, %200 in 1 : vector<8x8xf32>, vector<8x8xf32>, vector<8x8xf32>, vector<8x8xf32> -> vector<8x32xf32>
    %202 = tpu.concatenate %141, %160, %179, %198 in 1 : vector<8x8xf32>, vector<8x8xf32>, vector<8x8xf32>, vector<8x8xf32> -> vector<8x32xf32>
    %cst_89 = arith.constant dense<0.000000e+00> : vector<8x32xf32>
    %203 = tpu.matmul %201, %120, %cst_89 {dimension_numbers = #tpu.dot_dimension_numbers<[1], [0], [0], [1], [0, 0, 1, 1], [], []>} : vector<8x32xf32>, vector<32x32xf32>, vector<8x32xf32> -> vector<8x32xf32>
    %204 = arith.addf %203, %111 : vector<8x32xf32>
    %cst_90 = arith.constant dense<0.000000e+00> : vector<8xf32>
    %205 = vector.multi_reduction <add>, %204, %cst_90 [1] : vector<8x32xf32> to vector<8xf32>
    %206 = vector.shape_cast %205 : vector<8xf32> to vector<8x1xf32>
    %cst_91 = arith.constant 3.200000e+01 : f32
    %207 = vector.broadcast %cst_91 : f32 to vector<8x1xf32>
    %208 = arith.divf %206, %207 : vector<8x1xf32>
    %209 = vector.broadcast %208 : vector<8x1xf32> to vector<8x32xf32>
    %210 = arith.subf %204, %209 : vector<8x32xf32>
    %211 = arith.mulf %210, %210 : vector<8x32xf32>
    %cst_92 = arith.constant dense<0.000000e+00> : vector<8xf32>
    %212 = vector.multi_reduction <add>, %211, %cst_92 [1] : vector<8x32xf32> to vector<8xf32>
    %213 = vector.shape_cast %212 : vector<8xf32> to vector<8x1xf32>
    %cst_93 = arith.constant 3.200000e+01 : f32
    %214 = vector.broadcast %cst_93 : f32 to vector<8x1xf32>
    %215 = arith.divf %213, %214 : vector<8x1xf32>
    %216 = vector.broadcast %208 : vector<8x1xf32> to vector<8x32xf32>
    %217 = arith.subf %204, %216 : vector<8x32xf32>
    %cst_94 = arith.constant 9.99999974E-6 : f32
    %218 = vector.broadcast %cst_94 : f32 to vector<8x1xf32>
    %219 = arith.addf %215, %218 : vector<8x1xf32>
    %220 = math.rsqrt %219 : vector<8x1xf32>
    %221 = vector.broadcast %220 : vector<8x1xf32> to vector<8x32xf32>
    %222 = arith.mulf %217, %221 : vector<8x32xf32>
    %c0_95 = arith.constant 0 : index
    %c0_96 = arith.constant 0 : index
    %c0_97 = arith.constant 0 : index
    %223 = vector.load %arg17[%c0_95, %c0_96, %c0_97] : memref<1x8x32xf32, #tpu.memory_space<vmem>>, vector<1x8x32xf32>
    %224 = vector.shape_cast %223 : vector<1x8x32xf32> to vector<8x32xf32>
    %225 = vector.shape_cast %202 : vector<8x32xf32> to vector<1x8x32xf32>
    tpu.vector_store %arg17[%c0_95, %c0_96, %c0_97], %225 {strides = array<i32>} : memref<1x8x32xf32, #tpu.memory_space<vmem>>, vector<1x8x32xf32>,
    %c0_98 = arith.constant 0 : index
    %c0_99 = arith.constant 0 : index
    %226 = vector.load %arg13[%c0_98, %c0_99] : memref<32x64xf32, #tpu.memory_space<vmem>>, vector<32x64xf32>
    %cst_100 = arith.constant dense<0.000000e+00> : vector<8x64xf32>
    %227 = tpu.matmul %222, %226, %cst_100 {dimension_numbers = #tpu.dot_dimension_numbers<[1], [0], [0], [1], [0, 0, 1, 1], [], []>} : vector<8x32xf32>, vector<32x64xf32>, vector<8x64xf32> -> vector<8x64xf32>
    %cst_101 = arith.constant 0.000000e+00 : f32
    %228 = vector.broadcast %cst_101 : f32 to vector<8x64xf32>
    %229 = arith.maximumf %227, %228 : vector<8x64xf32>
    %c0_102 = arith.constant 0 : index
    %c0_103 = arith.constant 0 : index
    %230 = vector.load %arg14[%c0_102, %c0_103] : memref<64x32xf32, #tpu.memory_space<vmem>>, vector<64x32xf32>
    %cst_104 = arith.constant dense<0.000000e+00> : vector<8x32xf32>
    %231 = tpu.matmul %229, %230, %cst_104 {dimension_numbers = #tpu.dot_dimension_numbers<[1], [0], [0], [1], [0, 0, 1, 1], [], []>} : vector<8x64xf32>, vector<64x32xf32>, vector<8x32xf32> -> vector<8x32xf32>
    %232 = arith.addf %231, %222 : vector<8x32xf32>
    %cst_105 = arith.constant dense<0.000000e+00> : vector<8xf32>
    %233 = vector.multi_reduction <add>, %232, %cst_105 [1] : vector<8x32xf32> to vector<8xf32>
    %234 = vector.shape_cast %233 : vector<8xf32> to vector<8x1xf32>
    %cst_106 = arith.constant 3.200000e+01 : f32
    %235 = vector.broadcast %cst_106 : f32 to vector<8x1xf32>
    %236 = arith.divf %234, %235 : vector<8x1xf32>
    %237 = vector.broadcast %236 : vector<8x1xf32> to vector<8x32xf32>
    %238 = arith.subf %232, %237 : vector<8x32xf32>
    %239 = arith.mulf %238, %238 : vector<8x32xf32>
    %cst_107 = arith.constant dense<0.000000e+00> : vector<8xf32>
    %240 = vector.multi_reduction <add>, %239, %cst_107 [1] : vector<8x32xf32> to vector<8xf32>
    %241 = vector.shape_cast %240 : vector<8xf32> to vector<8x1xf32>
    %cst_108 = arith.constant 3.200000e+01 : f32
    %242 = vector.broadcast %cst_108 : f32 to vector<8x1xf32>
    %243 = arith.divf %241, %242 : vector<8x1xf32>
    %244 = vector.broadcast %236 : vector<8x1xf32> to vector<8x32xf32>
    %245 = arith.subf %232, %244 : vector<8x32xf32>
    %cst_109 = arith.constant 9.99999974E-6 : f32
    %246 = vector.broadcast %cst_109 : f32 to vector<8x1xf32>
    %247 = arith.addf %243, %246 : vector<8x1xf32>
    %248 = math.rsqrt %247 : vector<8x1xf32>
    %249 = vector.broadcast %248 : vector<8x1xf32> to vector<8x32xf32>
    %250 = arith.mulf %245, %249 : vector<8x32xf32>
    %c0_110 = arith.constant 0 : index
    %c0_111 = arith.constant 0 : index
    %c0_112 = arith.constant 0 : index
    %251 = vector.load %arg15[%c0_110, %c0_111, %c0_112] : memref<1x8x32xf32, #tpu.memory_space<vmem>>, vector<1x8x32xf32>
    %252 = vector.shape_cast %251 : vector<1x8x32xf32> to vector<8x32xf32>
    %253 = vector.shape_cast %250 : vector<8x32xf32> to vector<1x8x32xf32>
    tpu.vector_store %arg15[%c0_110, %c0_111, %c0_112], %253 {strides = array<i32>} : memref<1x8x32xf32, #tpu.memory_space<vmem>>, vector<1x8x32xf32>,
    return
  }
  func.func @transform_0(%arg0: i32) -> (i32, i32, i32) {
    %c0_i32 = arith.constant 0 : i32
    %c0_i32_0 = arith.constant 0 : i32
    %c0_i32_1 = arith.constant 0 : i32
    return %arg0, %c0_i32, %c0_i32_0 : i32, i32, i32
  }
  func.func @transform_1(%arg0: i32) -> (i32, i32, i32) {
    %c0_i32 = arith.constant 0 : i32
    %c0_i32_0 = arith.constant 0 : i32
    %c0_i32_1 = arith.constant 0 : i32
    return %arg0, %c0_i32, %c0_i32_0 : i32, i32, i32
  }
  func.func @transform_2(%arg0: i32) -> (i32, i32, i32) {
    %c0_i32 = arith.constant 0 : i32
    %c0_i32_0 = arith.constant 0 : i32
    %c0_i32_1 = arith.constant 0 : i32
    return %arg0, %c0_i32, %c0_i32_0 : i32, i32, i32
  }
  func.func @transform_3(%arg0: i32) -> (i32, i32, i32) {
    %c0_i32 = arith.constant 0 : i32
    %c0_i32_0 = arith.constant 0 : i32
    %c0_i32_1 = arith.constant 0 : i32
    return %arg0, %c0_i32, %c0_i32_0 : i32, i32, i32
  }
  func.func @transform_4(%arg0: i32) -> (i32, i32) {
    %c0_i32 = arith.constant 0 : i32
    %c0_i32_0 = arith.constant 0 : i32
    %c0_i32_1 = arith.constant 0 : i32
    return %c0_i32, %c0_i32_0 : i32, i32
  }
  func.func @transform_5(%arg0: i32) -> (i32, i32) {
    %c0_i32 = arith.constant 0 : i32
    %c0_i32_0 = arith.constant 0 : i32
    %c0_i32_1 = arith.constant 0 : i32
    return %c0_i32, %c0_i32_0 : i32, i32
  }
  func.func @transform_6(%arg0: i32) -> (i32, i32) {
    %c0_i32 = arith.constant 0 : i32
    %c0_i32_0 = arith.constant 0 : i32
    %c0_i32_1 = arith.constant 0 : i32
    return %c0_i32, %c0_i32_0 : i32, i32
  }
  func.func @transform_7(%arg0: i32) -> (i32, i32) {
    %c0_i32 = arith.constant 0 : i32
    %c0_i32_0 = arith.constant 0 : i32
    %c0_i32_1 = arith.constant 0 : i32
    return %c0_i32, %c0_i32_0 : i32, i32
  }
  func.func @transform_8(%arg0: i32) -> (i32, i32) {
    %c0_i32 = arith.constant 0 : i32
    %c0_i32_0 = arith.constant 0 : i32
    %c0_i32_1 = arith.constant 0 : i32
    return %c0_i32, %c0_i32_0 : i32, i32
  }
  func.func @transform_9(%arg0: i32) -> (i32, i32) {
    %c0_i32 = arith.constant 0 : i32
    %c0_i32_0 = arith.constant 0 : i32
    %c0_i32_1 = arith.constant 0 : i32
    return %c0_i32, %c0_i32_0 : i32, i32
  }
  func.func @transform_10(%arg0: i32) -> (i32, i32) {
    %c0_i32 = arith.constant 0 : i32
    %c0_i32_0 = arith.constant 0 : i32
    %c0_i32_1 = arith.constant 0 : i32
    return %c0_i32, %c0_i32_0 : i32, i32
  }
  func.func @transform_11(%arg0: i32) -> (i32, i32) {
    %c0_i32 = arith.constant 0 : i32
    %c0_i32_0 = arith.constant 0 : i32
    %c0_i32_1 = arith.constant 0 : i32
    return %c0_i32, %c0_i32_0 : i32, i32
  }
  func.func @transform_12(%arg0: i32) -> (i32, i32) {
    %c0_i32 = arith.constant 0 : i32
    %c0_i32_0 = arith.constant 0 : i32
    %c0_i32_1 = arith.constant 0 : i32
    return %c0_i32, %c0_i32_0 : i32, i32
  }
  func.func @transform_13(%arg0: i32) -> (i32, i32) {
    %c0_i32 = arith.constant 0 : i32
    %c0_i32_0 = arith.constant 0 : i32
    %c0_i32_1 = arith.constant 0 : i32
    return %c0_i32, %c0_i32_0 : i32, i32
  }
  func.func @transform_14(%arg0: i32) -> (i32, i32, i32) {
    %c0_i32 = arith.constant 0 : i32
    %c0_i32_0 = arith.constant 0 : i32
    %c0_i32_1 = arith.constant 0 : i32
    return %arg0, %c0_i32, %c0_i32_0 : i32, i32, i32
  }
  func.func @transform_15(%arg0: i32) -> (i32, i32, i32) {
    %c0_i32 = arith.constant 0 : i32
    %c0_i32_0 = arith.constant 0 : i32
    %c0_i32_1 = arith.constant 0 : i32
    return %arg0, %c0_i32, %c0_i32_0 : i32, i32, i32
  }
  func.func @transform_16(%arg0: i32) -> (i32, i32, i32) {
    %c0_i32 = arith.constant 0 : i32
    %c0_i32_0 = arith.constant 0 : i32
    %c0_i32_1 = arith.constant 0 : i32
    return %arg0, %c0_i32, %c0_i32_0 : i32, i32, i32
  }
}

</mosaic_0001>

<bundles_post_ra>
// kernel: tpu_custom_call.1
= control target key start
LH: loop header
LB: loop body
LE: loop exit
PB: predicated region body
PF: predicated region fallthrough
CT: control target
= control target key end

     0   :  { %s5242_s0 = inlined_call_operand.hbm [shape: f32[2,8,32], index: 0, kind: input, shape index: {}]   ;;  %s5243_s1 = inlined_call_operand.hbm [shape: f32[2,8,32], index: 1, kind: input, shape index: {}]   ;;  %s5244_s2 = inlined_call_operand.hbm [shape: f32[2,8,8], index: 2, kind: input, shape index: {}]   ;;  %s5245_s3 = inlined_call_operand.hbm [shape: f32[2,8,8], index: 3, kind: input, shape index: {}]   ;;  %s5246_s4 = inlined_call_operand.vmem [shape: f32[32,32], index: 4, kind: input, shape index: {}]   ;;  %s5247_s5 = inlined_call_operand.vmem [shape: f32[32,32], index: 5, kind: input, shape index: {}]   ;;  %s5248_s6 = inlined_call_operand.vmem [shape: f32[32,32], index: 6, kind: input, shape index: {}]   ;;  %s5249_s7 = inlined_call_operand.hbm [shape: f32[32,32], index: 7, kind: input, shape index: {}]   ;;  %s5250_s8 = inlined_call_operand.hbm [shape: f32[32,32], index: 8, kind: input, shape index: {}]   ;;  %s5251_s9 = inlined_call_operand.hbm [shape: f32[32,32], index: 9, kind: input, shape index: {}]   ;;  %s5252_s10 = inlined_call_operand.hbm [shape: f32[32,32], index: 10, kind: input, shape index: {}]   ;;  %s5253_s11 = inlined_call_operand.hbm [shape: f32[32,32], index: 11, kind: input, shape index: {}]   ;;  %s5254_s12 = inlined_call_operand.hbm [shape: f32[32,64], index: 12, kind: input, shape index: {}]   ;;  %s5255_s13 = inlined_call_operand.vmem [shape: f32[64,32], index: 13, kind: input, shape index: {}]   ;;  %s5256_s14 = inlined_call_operand.hbm [shape: f32[2,8,32], index: 14, kind: output, shape index: {0}]   ;;  %s5257_s15 = inlined_call_operand.hbm [shape: f32[2,8,32], index: 15, kind: output, shape index: {1}]   ;;  %s5258_s16 = inlined_call_operand.hbm [shape: f32[2,8,32], index: 16, kind: output, shape index: {2}]  }
   0x1   :  { %5296 = sst [smem:[#allocation39_spill]] %s5242_s0 }
   0x2   :  { %5297 = sst [smem:[#allocation40_spill]] %s5243_s1 }
   0x3   :  { %5298 = sst [smem:[#allocation41_spill]] %s5246_s4 }
   0x4   :  { %5299 = sst [smem:[#allocation42_spill]] %s5247_s5 }
   0x5   :  { %5300 = sst [smem:[#allocation43_spill]] %s5248_s6 }
   0x6   :  { %5301 = sst [smem:[#allocation44_spill]] %s5249_s7 }
   0x7   :  { %5302 = sst [smem:[#allocation45_spill]] %s5250_s8 }
   0x8   :  { %5303 = sst [smem:[#allocation46_spill]] %s5251_s9 }
   0x9   :  { %5304 = sst [smem:[#allocation47_spill]] %s5252_s10 }
   0xa   :  { %5305 = sst [smem:[#allocation48_spill]] %s5255_s13 }
   0xb   :  { %5306 = sst [smem:[#allocation49_spill]] %s5256_s14 }
   0xc   :  { %5307 = sst [smem:[#allocation50_spill]] %s5257_s15 }
   0xd   :  { %5308 = sst [smem:[#allocation51_spill]] %s5258_s16 }
   0xe   :  { %22 = vsyncpa [#allocation3], 0 }
   0xf   :  { %24 = vsyncpa [#allocation3 + $0x1], 0 }
  0x10   :  { %25 = vsyncpa [#allocation6], 0 }
  0x11   :  { %27 = vsyncpa [#allocation6 + $0x1], 0 }
  0x12   :  { %28 = vsyncpa [#allocation9], 0 }
  0x13   :  { %30 = vsyncpa [#allocation9 + $0x1], 0 }
  0x14   :  { %31 = vsyncpa [#allocation12], 0 }
  0x15   :  { %32 = vsyncpa [#allocation15], 0 }
  0x16   :  { %33 = vsyncpa [#allocation18], 0 }
  0x17   :  { %34 = vsyncpa [#allocation4], 0 }
  0x18   :  { %36 = vsyncpa [#allocation4 + $0x1], 0 }
  0x19   :  { %37 = vsyncpa [#allocation21], 0 }
  0x1a   :  { %39 = vsyncpa [#allocation21 + $0x1], 0  ;;  %s4401_s21 = smov 0   ;;  %s4403_s22 = smov 0  }
  0x1b   :  { %s4405_s23 = smov 0   ;;  %s4407_s24 = smov 0  }
  0x1c LB: > { %5309 = sst [smem:[#allocation32_spill]] %s4278_s21  ;;  %s4292_s25 = smov [#allocation10]   ;;  %s4290_s24 = sphi %s4407_s24, %s5366_s24   ;;  %s4286_s23 = sphi %s4405_s23, %s5370_s23   ;;  %s4282_s22 = sphi %s4403_s22, %s5369_s22   ;;  %s4278_s21 = sphi %s4401_s21, %s5368_s21  }
  0x1d   : > { %s463_s26 = sshll.u32 %s4292_s25, 4  ;;  %s4422_s27 = sadd.s32 4294967295, %s4290_s24   ;;  %s4427_s26 = int_to_ptr.vmem [resolvable:$true] %s463_s26 }
  0x1e   : > { %5310 = sst [smem:[#allocation33_spill]] %s4422_s27  ;;  %p3249_p0 = scmp.ge.s32.totalorder %s4290_s24, 1 }
  0x1f   : > { %p5276_p1 = scmp.eq.s32.totalorder %s4422_s27, 0  ;;  %p442_p2 = scmp.lt.s32.totalorder %s4290_s24, 3 }
  0x20   : > { %s4293_s29 = smov [#allocation11]   ;;  %s4294_s17 = smov [#allocation14]  }
  0x21   : > { %p4429_p3 = pnand %p3249_p0, %p442_p2  ;;  %s476_s30 = sshll.u32 %s4293_s29, 4  ;;  %s4442_s30 = int_to_ptr.vmem [resolvable:$true] %s476_s30 }
  0x22   : > { %s502_s18 = sshll.u32 %s4294_s17, 4  ;;  %s5313_s7 = sld [smem:[#allocation44_spill]]  ;;  %s4444_s18 = int_to_ptr.vmem [resolvable:$true] %s502_s18 }
  0x23   : > { %s5311_s28 = scalar_select %p4429_p3, 1, 0 }
  0x24   : > { %p3709_p5 = pneg %p4429_p3 }
  0x26   : > { %p4438_p6 = pnand %p3709_p5, %p5276_p1 }
  0x28   : > { %s5312_s0 = scalar_select %p4438_p6, 1, 0 }
  0x29   : > { %s3852_s25 = scalar_lea.hbm %s5313_s7, 512  ;;  %p4454_p8 = pneg %p4438_p6 }
  0x2a   : > { %p3853_p7 = scmp.ne.s32.totalorder %s5313_s7, %s3852_s25  ;;  %p3859_p11 = scmp.lt.u32.totalorder %s3852_s25, %s5313_s7 }
  0x2b   : > { %s5314_s29 = scalar_select %p4454_p8, 1, 0 }
  0x2c   : > { %p3855_p9 = pnand %p4454_p8, %p3853_p7 }
  0x2e   : > { %p3856_p10 = pneg %p3855_p9 }
  0x30   : > { %p3861_p12 = pnand %p3859_p11, %p3856_p10 }
  0x32   : > { %3864 = shalt.err (!%p3861_p12)
}
  0x33   : > { %s3865_s14 = scalar_lea.vmem %s4427_s26, 512  ;;  %p3873_p5 = scmp.lt.s32.totalorder %s4427_s26, %s4427_s26 }
  0x34   : > { %p3866_p13 = scmp.ne.s32.totalorder %s4427_s26, %s3865_s14  ;;  %p3874_p4 = scmp.lt.s32.totalorder %s3865_s14, %s3865_s14 }
  0x36   : > { %p3868_p0 = pnand %p3866_p13, %p4454_p8  ;;  %p3875_p7 = por %p3874_p4, %p3873_p5 }
  0x38   : > { %p3869_p2 = pneg %p3868_p0 }
  0x3a   : > { %p3876_p9 = pnand %p3875_p7, %p3869_p2 }
  0x3c   : > { %3879 = shalt.err (!%p3876_p9)
}
  0x3d   : > { %s5269_s16 = smov 128   ;;  %s5272_s15 = smov 8  }
  0x3e   : > { %3712 = dma.hbm_to_vmem [thread:$0]  (!%p4438_p6), %s5313_s7, 512, %s4427_s26, [#allocation9], %s5269_s16, %s5269_s16, %s5272_s15  }
  0x3f   : > { %s5315_s8 = sld [smem:[#allocation45_spill]] }
  0x45   : > { %s3880_s14 = scalar_lea.hbm %s5315_s8, 512 }
  0x46   : > { %p3881_p4 = scmp.ne.s32.totalorder %s5315_s8, %s3880_s14  ;;  %p3887_p12 = scmp.lt.u32.totalorder %s3880_s14, %s5315_s8 }
  0x48   : > { %p3883_p10 = pnand %p3881_p4, %p4454_p8 }
  0x4a   : > { %p3884_p11 = pneg %p3883_p10 }
  0x4c   : > { %p3889_p13 = pnand %p3887_p12, %p3884_p11 }
  0x4e   : > { %3892 = shalt.err (!%p3889_p13)
}
  0x4f   : > { %s3893_s26 = scalar_lea.vmem %s4442_s30, 512  ;;  %p3901_p7 = scmp.lt.s32.totalorder %s4442_s30, %s4442_s30 }
  0x50   : > { %p3894_p0 = scmp.ne.s32.totalorder %s4442_s30, %s3893_s26  ;;  %p3902_p9 = scmp.lt.s32.totalorder %s3893_s26, %s3893_s26 }
  0x52   : > { %p3896_p2 = pnand %p3894_p0, %p4454_p8  ;;  %p3903_p4 = por %p3902_p9, %p3901_p7 }
  0x54   : > { %p3897_p5 = pneg %p3896_p2 }
  0x56   : > { %p3904_p10 = pnand %p3903_p4, %p3897_p5 }
  0x58   : > { %3907 = shalt.err (!%p3904_p10)
}
  0x59   : > { %3715 = dma.hbm_to_vmem [thread:$0]  (!%p4438_p6), %s5315_s8, 512, %s4442_s30, [#allocation12], %s5269_s16, %s5269_s16, %s5272_s15  }
  0x5a   : > { %s5316_s10 = sld [smem:[#allocation47_spill]] }
  0x60   : > { %s3908_s19 = scalar_lea.hbm %s5316_s10, 512 }
  0x61   : > { %p3909_p11 = scmp.ne.s32.totalorder %s5316_s10, %s3908_s19  ;;  %p3915_p0 = scmp.lt.u32.totalorder %s3908_s19, %s5316_s10 }
  0x63   : > { %p3911_p12 = pnand %p3909_p11, %p4454_p8 }
  0x65   : > { %p3912_p13 = pneg %p3911_p12 }
  0x67   : > { %p3917_p2 = pnand %p3915_p0, %p3912_p13 }
  0x69   : > { %3920 = shalt.err (!%p3917_p2)
}
  0x6a   : > { %s3921_s30 = scalar_lea.vmem %s4444_s18, 512  ;;  %p3929_p4 = scmp.lt.s32.totalorder %s4444_s18, %s4444_s18 }
  0x6b   : > { %p3922_p5 = scmp.ne.s32.totalorder %s4444_s18, %s3921_s30  ;;  %p3930_p10 = scmp.lt.s32.totalorder %s3921_s30, %s3921_s30 }
  0x6d   : > { %p3924_p7 = pnand %p3922_p5, %p4454_p8  ;;  %p3931_p11 = por %p3930_p10, %p3929_p4 }
  0x6f   : > { %p3925_p9 = pneg %p3924_p7 }
  0x71   : > { %p3932_p12 = pnand %p3931_p11, %p3925_p9 }
  0x73   : > { %3935 = shalt.err (!%p3932_p12)
}
  0x74   : > { %3721 = dma.hbm_to_vmem [thread:$0]  (!%p4438_p6), %s5316_s10, 512, %s4444_s18, [#allocation15], %s5269_s16, %s5269_s16, %s5272_s15  }
  0x75   : > { %s5268_s5 = sadd.s32 4294967294, %s4290_s24   ;;  %s4532_s6 = sadd.s32 1, %s4290_s24  }
  0x76   : > { %5317 = sst [smem:[#allocation34_spill]] %s4532_s6  ;;  %s52_s13 = sadd.s32 1, %s4286_s23 }
  0x77   : > { %s49_s19 = ssub.s32 %s4290_s24, %s4532_s6  ;;  %p59_p13 = scmp.ne.s32.totalorder %s4286_s23, %s4282_s22 }
  0x78   : > { %p50_p0 = scmp.eq.s32.totalorder %s49_s19, 0  ;;  %p60_p2 = scmp.eq.s32.totalorder %s4290_s24, 0 }
  0x79   : > { %p65_p5 = scmp.ne.s32.totalorder %s4282_s22, %s4278_s21  ;;  %p377_p7 = scmp.eq.s32.totalorder %s4422_s27, 1 }
  0x7a   : > { %s4544_s20 = scalar_select %p50_p0, %s4286_s23, %s52_s13  }
  0x7b   : > { %p61_p9 = por %p60_p2, %p59_p13  ;;  %p4548_p4 = por %p5276_p1, %p65_p5 }
  0x7c   : > { %5318 = sst [smem:[#allocation35_spill]] %s4544_s20  ;;  %p4552_p10 = por %p377_p7, %p59_p13 }
  0x7d   : > { %s5319_s18 = scalar_select %p4548_p4, 1, 0 }
  0x7e   : > { %s5321_s25 = scalar_select %p4552_p10, 1, 0 }
  0x7f   : > { %5320 = sst [smem:[#allocation36_spill]] %s5319_s18  ;;  %p383_p11 = scmp.eq.s32.totalorder %s5268_s5, 1 }
  0x80   : > { %5322 = sst [smem:[#allocation37_spill]] %s5321_s25  ;;  %p3757_p12 = scmp.lt.s32.totalorder %s4290_s24, 2 }
  0x81   : > { %s5271_s17 = sand.u32 1, %s4286_s23   ;;  %p4560_p3 = por %p383_p11, %p65_p5 }
  0x82   : > { %s4566_s30 = sshll.u32 %s5271_s17, 3  ;;  %s4569_s26 = sshll.u32 %s4290_s24, 7 }
  0x83   : > { %s5323_s14 = scalar_select %p4560_p3, 1, 0 }
  0x84   : > { %p4571_p0 = pnand %p3757_p12, %p61_p9  ;;  %s5278_s13 = sand.u32 1, %s4290_s24  }
  0x85   : > { %5324 = sst [smem:[#allocation38_spill]] %s5323_s14  ;;  %s5326_s1 = sld [smem:[#allocation40_spill]] }
  0x86   : > { %s5325_s4 = scalar_select %p4571_p0, 1, 0 }
  0x87   : > { %s567_s17 = scalar_lea.vmem [#allocation5], %s4566_s30  ;;  %s4587_s7 = scalar_lea.sflag [#allocation6], %s5278_s13 }
  0x88   : > { %s574_s15 = sshll.u32 %s567_s17, 4  ;;  %p4593_p2 = pneg %p4571_p0  ;;  %s4583_s15 = int_to_ptr.vmem [resolvable:$true] %s574_s15 }
  0x8a   : > { %s5327_s10 = scalar_select %p4593_p2, 1, 0 }
  0x8b   : > { %s4580_s16 = scalar_lea.hbm %s5326_s1, %s4569_s26  ;;  %s3941_s17 = scalar_lea.hbm %s5326_s1, 256 }
  0x8c   : > { %s3936_s8 = scalar_lea.hbm %s4580_s16, 128  ;;  %p3942_p9 = scmp.lt.u32.totalorder %s4580_s16, %s5326_s1 }
  0x8d   : > { %p3937_p13 = scmp.ne.s32.totalorder %s4580_s16, %s3936_s8  ;;  %p3943_p11 = scmp.lt.u32.totalorder %s3941_s17, %s3936_s8 }
  0x8e   : > { %p3945_p1 = scmp.lt.u32.totalorder %s3936_s8, %s4580_s16 }
  0x8f   : > { %p3939_p5 = pnand %p4593_p2, %p3937_p13  ;;  %p3944_p12 = por %p3943_p11, %p3942_p9 }
  0x91   : > { %p3940_p7 = pneg %p3939_p5  ;;  %p3946_p3 = por %p3945_p1, %p3944_p12 }
  0x93   : > { %p3947_p10 = pnand %p3946_p3, %p3940_p7 }
  0x95   : > { %3950 = shalt.err (!%p3947_p10)
}
  0x96   : > { %s3951_s13 = scalar_lea.vmem %s4583_s15, 128  ;;  %s4297_s5 = smov [#allocation5]  }
  0x97   : > { %p3952_p13 = scmp.ne.s32.totalorder %s4583_s15, %s3951_s13  ;;  %s3956_s19 = sshll.u32 %s4297_s5, 4  ;;  %s3957_s19 = int_to_ptr.vmem [resolvable:$false] %s3956_s19 }
  0x98   : > { %s3958_s6 = scalar_lea.vmem %s3957_s19, 256  ;;  %p3959_p6 = scmp.lt.s32.totalorder %s4583_s15, %s3957_s19 }
  0x99   : > { %p3954_p5 = pnand %p3952_p13, %p4593_p2  ;;  %p3960_p8 = scmp.lt.s32.totalorder %s3958_s6, %s3951_s13 }
  0x9b   : > { %p3955_p4 = pneg %p3954_p5  ;;  %p3961_p9 = por %p3960_p8, %p3959_p6 }
  0x9d   : > { %p3962_p11 = pnand %p3961_p9, %p3955_p4 }
  0x9f   : > { %3965 = shalt.err (!%p3962_p11)
}
  0xa0   : > { %3734 = dma.hbm_to_vmem [thread:$0]  (!%p4571_p0), %s4580_s16, 128, %s4583_s15, %s4587_s7  }
  0xa1   : > { %s4298_s8 = smov [#allocation13]   ;;  %s4299_s17 = smov [#allocation16]  }
  0xa2   : > { %s489_s20 = sshll.u32 %s4298_s8, 4  ;;  %s515_s1 = sshll.u32 %s4299_s17, 4  ;;  %s490_s20 = int_to_ptr.vmem [resolvable:$true] %s489_s20  ;;  %s4617_s1 = int_to_ptr.vmem [resolvable:$true] %s515_s1 }
  0xa3   : > { %s5328_s9 = sld [smem:[#allocation46_spill]]  ;;  %p5329_p3 = scmp.ne.s32.totalorder %s5314_s29, 0 }
  0xa9   : > { %s3966_s13 = scalar_lea.hbm %s5328_s9, 512 }
  0xaa   : > { %p3967_p1 = scmp.ne.s32.totalorder %s5328_s9, %s3966_s13  ;;  %p3973_p4 = scmp.lt.u32.totalorder %s3966_s13, %s5328_s9 }
  0xac   : > { %p3969_p6 = pnand %p3967_p1, %p5329_p3 }
  0xae   : > { %p3970_p8 = pneg %p3969_p6 }
  0xb0   : > { %p3975_p10 = pnand %p3973_p4, %p3970_p8 }
  0xb2   : > { %3978 = shalt.err (!%p3975_p10)
}
  0xb3   : > { %s3979_s15 = scalar_lea.vmem %s490_s20, 512  ;;  %p3987_p5 = scmp.lt.s32.totalorder %s490_s20, %s490_s20 }
  0xb4   : > { %p3980_p7 = scmp.ne.s32.totalorder %s490_s20, %s3979_s15  ;;  %p3988_p9 = scmp.lt.s32.totalorder %s3979_s15, %s3979_s15 }
  0xb6   : > { %p3982_p12 = pnand %p3980_p7, %p5329_p3  ;;  %p3989_p11 = por %p3988_p9, %p3987_p5 }
  0xb8   : > { %p3983_p13 = pneg %p3982_p12 }
  0xba   : > { %p3990_p0 = pnand %p3989_p11, %p3983_p13 }
  0xbc   : > { %3993 = shalt.err (!%p3990_p0)
}
  0xbd   : > { %p5330_p1 = scmp.ne.s32.totalorder %s5312_s0, 0  ;;  %s5331_s14 = smov 8  }
  0xbe   : > { %s5332_s8 = smov 128   ;;  %s3994_s13 = scalar_lea.hbm %s5253_s11, 512 }
  0xbf   : > { %3718 = dma.hbm_to_vmem [thread:$0]  (!%p5330_p1), %s5328_s9, 512, %s490_s20, [#allocation12], %s5332_s8, %s5332_s8, %s5331_s14  }
  0xc0   : > { %p3995_p6 = scmp.ne.s32.totalorder %s5253_s11, %s3994_s13  ;;  %p4001_p4 = scmp.lt.u32.totalorder %s3994_s13, %s5253_s11 }
  0xc2   : > { %p3997_p0 = pnand %p3995_p6, %p5329_p3 }
  0xc4   : > { %p3998_p8 = pneg %p3997_p0 }
  0xc6   : > { %p4003_p10 = pnand %p4001_p4, %p3998_p8 }
  0xc8   : > { %4006 = shalt.err (!%p4003_p10)
}
  0xc9   : > { %s4007_s20 = scalar_lea.vmem %s4617_s1, 512  ;;  %p4015_p5 = scmp.lt.s32.totalorder %s4617_s1, %s4617_s1 }
  0xca   : > { %p4008_p7 = scmp.ne.s32.totalorder %s4617_s1, %s4007_s20  ;;  %p4016_p9 = scmp.lt.s32.totalorder %s4007_s20, %s4007_s20 }
  0xcc   : > { %p4010_p12 = pnand %p4008_p7, %p5329_p3  ;;  %p4017_p11 = por %p4016_p9, %p4015_p5 }
  0xce   : > { %p4011_p13 = pneg %p4010_p12 }
  0xd0   : > { %p4018_p6 = pnand %p4017_p11, %p4011_p13 }
  0xd2   : > { %4021 = shalt.err (!%p4018_p6)
}
  0xd3   : > { %3724 = dma.hbm_to_vmem [thread:$0]  (!%p5330_p1), %s5253_s11, 512, %s4617_s1, [#allocation15], %s5332_s8, %s5332_s8, %s5331_s14  }
  0xd4   : > { %s4300_s17 = smov [#allocation17]   ;;  %s5333_s6 = sld [smem:[#allocation39_spill]] }
  0xd5   : > { %s528_s5 = sshll.u32 %s4300_s17, 4  ;;  %s4022_s9 = scalar_lea.hbm %s5254_s12, 512  ;;  %s529_s5 = int_to_ptr.vmem [resolvable:$true] %s528_s5 }
  0xd6   : > { %p4023_p0 = scmp.ne.s32.totalorder %s5254_s12, %s4022_s9  ;;  %p4029_p10 = scmp.lt.u32.totalorder %s4022_s9, %s5254_s12 }
  0xd8   : > { %p4025_p8 = pnand %p4023_p0, %p5329_p3 }
  0xda   : > { %s4670_s16 = scalar_lea.hbm %s5333_s6, %s4569_s26  ;;  %p4026_p4 = pneg %p4025_p8 }
  0xdc   : > { %p4031_p7 = pnand %p4029_p10, %p4026_p4 }
  0xde   : > { %4034 = shalt.err (!%p4031_p7)
}
  0xdf   : > { %s4035_s21 = scalar_lea.vmem %s529_s5, 512  ;;  %p4043_p9 = scmp.lt.s32.totalorder %s529_s5, %s529_s5 }
  0xe0   : > { %p4036_p12 = scmp.ne.s32.totalorder %s529_s5, %s4035_s21  ;;  %p4044_p11 = scmp.lt.s32.totalorder %s4035_s21, %s4035_s21 }
  0xe2   : > { %p4038_p13 = pnand %p4036_p12, %p5329_p3  ;;  %p4045_p6 = por %p4044_p11, %p4043_p9 }
  0xe4   : > { %p4039_p5 = pneg %p4038_p13 }
  0xe6   : > { %p4046_p2 = pnand %p4045_p6, %p4039_p5 }
  0xe8   : > { %4049 = shalt.err (!%p4046_p2)
}
  0xe9   : > { %3727 = dma.hbm_to_vmem [thread:$0]  (!%p5330_p1), %s5254_s12, 512, %s529_s5, [#allocation18], %s5332_s8, %s5332_s8, %s5331_s14  }
  0xea   : > { %s549_s29 = scalar_lea.vmem [#allocation2], %s4566_s30  ;;  %s4700_s19 = scalar_lea.hbm %s5244_s2, %s4569_s26 }
  0xeb   : > { %s556_s18 = sshll.u32 %s549_s29, 4  ;;  %s5334_s13 = sand.u32 1, %s4286_s23   ;;  %s4694_s18 = int_to_ptr.vmem [resolvable:$true] %s556_s18 }
  0xec   : > { %s546_s15 = scalar_lea.sflag [#allocation3], %s5334_s13  ;;  %s4050_s20 = scalar_lea.hbm %s4670_s16, 128 }
  0xed   : > { %p4051_p2 = scmp.ne.s32.totalorder %s4670_s16, %s4050_s20  ;;  %p5335_p3 = scmp.ne.s32.totalorder %s5327_s10, 0 }
  0xee   : > { %s4055_s14 = scalar_lea.hbm %s5333_s6, 256  ;;  %p4056_p1 = scmp.lt.u32.totalorder %s4670_s16, %s5333_s6 }
  0xef   : > { %p4053_p0 = pnand %p4051_p2, %p5335_p3  ;;  %p4057_p4 = scmp.lt.u32.totalorder %s4055_s14, %s4050_s20 }
  0xf0   : > { %p4059_p7 = scmp.lt.u32.totalorder %s4050_s20, %s4670_s16 }
  0xf1   : > { %p4054_p8 = pneg %p4053_p0  ;;  %p4058_p10 = por %p4057_p4, %p4056_p1 }
  0xf3   : > { %p4060_p12 = por %p4059_p7, %p4058_p10 }
  0xf5   : > { %p4061_p13 = pnand %p4060_p12, %p4054_p8 }
  0xf7   : > { %4064 = shalt.err (!%p4061_p13)
}
  0xf8   : > { %s4065_s21 = scalar_lea.vmem %s4694_s18, 128  ;;  %s4301_s27 = smov [#allocation2]  }
  0xf9   : > { %p4066_p5 = scmp.ne.s32.totalorder %s4694_s18, %s4065_s21  ;;  %s4070_s9 = sshll.u32 %s4301_s27, 4  ;;  %s4071_s9 = int_to_ptr.vmem [resolvable:$false] %s4070_s9 }
  0xfa   : > { %s4072_s29 = scalar_lea.vmem %s4071_s9, 256  ;;  %p4073_p6 = scmp.lt.s32.totalorder %s4694_s18, %s4071_s9 }
  0xfb   : > { %p4068_p9 = pnand %p4066_p5, %p5335_p3  ;;  %p4074_p2 = scmp.lt.s32.totalorder %s4072_s29, %s4065_s21 }
  0xfd   : > { %p4069_p11 = pneg %p4068_p9  ;;  %p4075_p0 = por %p4074_p2, %p4073_p6 }
  0xff   : > { %p4076_p1 = pnand %p4075_p0, %p4069_p11 }
 0x101   : > { %4079 = shalt.err (!%p4076_p1)
}
 0x102   : > { %p5336_p8 = scmp.ne.s32.totalorder %s5325_s4, 0  ;;  %s585_s0 = scalar_lea.vmem [#allocation7], %s4566_s30 }
 0x103   : > { %s592_s17 = sshll.u32 %s585_s0, 4  ;;  %s4730_s1 = scalar_lea.hbm %s5245_s3, %s4569_s26  ;;  %s593_s17 = int_to_ptr.vmem [resolvable:$true] %s592_s17 }
 0x104   : > { %3731 = dma.hbm_to_vmem [thread:$0]  (!%p5336_p8), %s4670_s16, 128, %s4694_s18, %s546_s15  }
 0x105   : > { %s4080_s25 = scalar_lea.hbm %s4700_s19, 128  ;;  %s4085_s5 = scalar_lea.hbm %s5244_s2, 256 }
 0x106   : > { %p4081_p4 = scmp.ne.s32.totalorder %s4700_s19, %s4080_s25  ;;  %p4086_p12 = scmp.lt.u32.totalorder %s4700_s19, %s5244_s2 }
 0x107   : > { %p4087_p13 = scmp.lt.u32.totalorder %s4085_s5, %s4080_s25  ;;  %p4089_p9 = scmp.lt.u32.totalorder %s4080_s25, %s4700_s19 }
 0x108   : > { %p4083_p10 = pnand %p4081_p4, %p5335_p3 }
 0x109   : > { %p4088_p5 = por %p4087_p13, %p4086_p12 }
 0x10a   : > { %p4084_p7 = pneg %p4083_p10 }
 0x10b   : > { %p4090_p11 = por %p4089_p9, %p4088_p5 }
 0x10d   : > { %p4091_p6 = pnand %p4090_p11, %p4084_p7 }
 0x10f   : > { %4094 = shalt.err (!%p4091_p6)
}
 0x110   : > { %s4095_s26 = scalar_lea.vmem %s593_s17, 128  ;;  %s4302_s16 = smov [#allocation7]  }
 0x111   : > { %p4096_p2 = scmp.ne.s32.totalorder %s593_s17, %s4095_s26  ;;  %s4100_s18 = sshll.u32 %s4302_s16, 4  ;;  %s4101_s18 = int_to_ptr.vmem [resolvable:$false] %s4100_s18 }
 0x112   : > { %s4102_s15 = scalar_lea.vmem %s4101_s18, 256  ;;  %p4103_p4 = scmp.lt.s32.totalorder %s593_s17, %s4101_s18 }
 0x113   : > { %p4098_p0 = pnand %p4096_p2, %p5335_p3  ;;  %p4104_p10 = scmp.lt.s32.totalorder %s4102_s15, %s4095_s26 }
 0x115   : > { %p4099_p1 = pneg %p4098_p0  ;;  %p4105_p8 = por %p4104_p10, %p4103_p4 }
 0x117   : > { %p4106_p12 = pnand %p4105_p8, %p4099_p1 }
 0x119   : > { %4109 = shalt.err (!%p4106_p12)
}
 0x11a   : > { %p5337_p13 = scmp.ne.s32.totalorder %s5325_s4, 0  ;;  %s603_s9 = scalar_lea.vmem [#allocation8], %s4566_s30 }
 0x11b   : > { %s610_s29 = sshll.u32 %s603_s9, 4  ;;  %s5338_s0 = sand.u32 1, %s4290_s24   ;;  %s611_s29 = int_to_ptr.vmem [resolvable:$true] %s610_s29 }
 0x11c   : > { %3737 = dma.hbm_to_vmem [thread:$0]  (!%p5337_p13), %s4700_s19, 128, %s593_s17, %s4587_s7  }
 0x11d   : > { %s600_s13 = scalar_lea.sflag [#allocation9], %s5338_s0  ;;  %s4110_s20 = scalar_lea.hbm %s4730_s1, 128 }
 0x11e   : > { %p4111_p8 = scmp.ne.s32.totalorder %s4730_s1, %s4110_s20  ;;  %s4115_s8 = scalar_lea.hbm %s5245_s3, 256 }
 0x11f   : > { %p4116_p9 = scmp.lt.u32.totalorder %s4730_s1, %s5245_s3  ;;  %p4117_p11 = scmp.lt.u32.totalorder %s4115_s8, %s4110_s20 }
 0x120   : > { %p4113_p7 = pnand %p4111_p8, %p5335_p3  ;;  %p4119_p2 = scmp.lt.u32.totalorder %s4110_s20, %s4730_s1 }
 0x121   : > { %p4118_p6 = por %p4117_p11, %p4116_p9 }
 0x122   : > { %p4114_p5 = pneg %p4113_p7 }
 0x123   : > { %p4120_p0 = por %p4119_p2, %p4118_p6 }
 0x125   : > { %p4121_p1 = pnand %p4120_p0, %p4114_p5 }
 0x127   : > { %4124 = shalt.err (!%p4121_p1)
}
 0x128   : > { %s4125_s7 = scalar_lea.vmem %s611_s29, 128  ;;  %s4303_s30 = smov [#allocation8]  }
 0x129   : > { %p4126_p4 = scmp.ne.s32.totalorder %s611_s29, %s4125_s7  ;;  %s4130_s19 = sshll.u32 %s4303_s30, 4  ;;  %s4131_s19 = int_to_ptr.vmem [resolvable:$false] %s4130_s19 }
 0x12a   : > { %s4132_s17 = scalar_lea.vmem %s4131_s19, 256  ;;  %p4133_p8 = scmp.lt.s32.totalorder %s611_s29, %s4131_s19 }
 0x12b   : > { %p4128_p10 = pnand %p4126_p4, %p5335_p3  ;;  %p4134_p7 = scmp.lt.s32.totalorder %s4132_s17, %s4125_s7 }
 0x12d   : > { %p4129_p12 = pneg %p4128_p10  ;;  %p4135_p13 = por %p4134_p7, %p4133_p8 }
 0x12f   : > { %p4136_p9 = pnand %p4135_p13, %p4129_p12 }
 0x131   : > { %4139 = shalt.err (!%p4136_p9)
}
 0x132   : > { %p5339_p11 = scmp.ne.s32.totalorder %s5325_s4, 0  ;;  %p5340_p5 = scmp.ne.s32.totalorder %s5311_s28, 0 }
 0x133   : > { %s5341_s10 = sld [smem:[#allocation36_spill]] (!%p5340_p5)  ;;  %s4773_s27 = sand.u32 (!%p5340_p5), 1, %s4282_s22  }
 0x134   : > { %3740 = dma.hbm_to_vmem [thread:$0]  (!%p5339_p11), %s4730_s1, 128, %s611_s29, %s600_s13  }
 0x135   : > { %619 = sbr.rel (%p5340_p5) target bundleno = 4549 (0x11c5), region = 76  ;;  %s4776_s26 = sshll.u32 (!%p5340_p5), %s4773_s27, 3 }
 0x136   : > { %s622_s16 = scalar_lea.sflag (!%p5340_p5), [#allocation3], %s4773_s27  ;;  %s625_s18 = scalar_lea.vmem (!%p5340_p5), [#allocation2], %s4776_s26 }
 0x139   : > { %p5342_p3 = scmp.ne.s32.totalorder (!%p5340_p5), %s5341_s10, 0 }
 0x13c   : > { %4241 = dma.done.wait (%p5342_p3), %s622_s16, 128  }
 0x13d   : > { %4243 = vsyncadd (%p5342_p3), %s622_s16, 4294967168  ;;  %s5343_s4 = sld [smem:[#allocation33_spill]]  ;;  %s634_s15 = scalar_lea.vmem [#allocation5], %s4776_s26 }
 0x143   : > { %s4785_s28 = sand.u32 1, %s5343_s4  }
 0x144   : > { %s631_s1 = scalar_lea.sflag [#allocation6], %s4785_s28 }
 0x145   : > { %4245 = dma.done.wait (%p5342_p3), %s631_s1, 256  }
 0x146   : > { %4247 = vsyncadd (%p5342_p3), %s631_s1, 4294967040  ;;  %s643_s9 = scalar_lea.vmem [#allocation7], %s4776_s26  ;;  %s649_s29 = scalar_lea.sflag [#allocation9], %s4785_s28 }
 0x147   : > { %s652_s0 = scalar_lea.vmem [#allocation8], %s4776_s26 }
 0x148   : > { %4249 = dma.done.wait (%p5342_p3), %s649_s29, 128  }
 0x149   : > { %4251 = vsyncadd (%p5342_p3), %s649_s29, 4294967168  ;;  %p5344_p13 = scmp.eq.s32.totalorder %s5343_s4, 0 }
 0x14b   : > { %4253 = dma.done.wait (%p5344_p13), [#allocation9], 512   ;;  %p5345_p6 = pmov %p5344_p13 }
 0x14d   : > { %4255 = vsyncadd (%p5345_p6), [#allocation9], 4294966784  ;;  %p5346_p2 = pmov %p5345_p6 }
 0x14f   : > { %4257 = dma.done.wait (%p5346_p2), [#allocation12], 1024   ;;  %p5347_p0 = pmov %p5346_p2 }
 0x151   : > { %4259 = vsyncadd (%p5347_p0), [#allocation12], 4294966272  ;;  %p5348_p1 = pmov %p5347_p0 }
 0x152   : > { %p5349_p4 = pmov %p5347_p0 }
 0x153   : > { %4261 = dma.done.wait (%p5348_p1), [#allocation15], 1024  }
 0x154   : > { %4263 = vsyncadd (%p5349_p4), [#allocation15], 4294966272  ;;  %p5350_p10 = pmov %p5347_p0 }
 0x155   : > { %p5351_p12 = pmov %p5347_p0 }
 0x156   : > { %4265 = dma.done.wait (%p5350_p10), [#allocation18], 512  }
 0x157   : > { %4267 = vsyncadd (%p5351_p12), [#allocation18], 4294966784  ;;  %v4304_v0 = vmov 0.0|0.0   ;;  %vm4305_vm0 = vmmov 0   ;;  %v4306_v1 = vmov 0.0   ;;  %s5352_s25 = sld [smem:[#allocation41_spill]] }
 0x158   : > { %3605 = vmatprep.subr.bf16.mxu1 %v4304_v0  ;;  %3415 = vmatprep.mubr.msk.f32.mxu1 %vm4305_vm0, %v4306_v1  ;;  %s5353_s10 = sld [smem:[#allocation42_spill]]  ;;  %v4843_v10 = vld [vmem:[%s625_s18] sm:$0xff]  ;;  %vm769_vm1 = vcmask 261120   ;;  %s5354_s5 = sld [smem:[#allocation43_spill]]  ;;  %vm983_vm2 = vcmask 64512   ;;  %vm1658_vm4 = vcmask 130048  }
 0x159   : > { %3617 = vmatprep.subr.bf16.mxu0 %v4304_v0  ;;  %3437 = vmatprep.mubr.msk.f32.mxu0 %vm4305_vm0, %v4306_v1  ;;  %s4307_s1 = smov 112   ;;  %s4308_s29 = smov 120   ;;  %v752_v33 = vld [vmem:[%s643_s9] sm:$0xff]  ;;  %vm1660_vm5 = vcmask 195584   ;;  %vm2856_vm7 = vcmask 523264  }
 0x15a   : > { %s4309_s13 = smov 104   ;;  %vm1060_vm3 = vcmp.gt.f32.partialorder %v752_v33, 0.5  ;;  %s4310_s9 = smov 8  }
 0x15b   : > { %s4311_s20 = smov 16   ;;  %s4312_s14 = smov 24  }
 0x15c   : > { %s5355_s18 = sld [smem:[#allocation48_spill]]  ;;  %s749_s21 = scalar_lea.vmem [#allocation22], %s4776_s26 }
 0x15d   : > { %v753_v2 = vld [vmem:[%s5352_s25] sm:$0xff]  ;;  %v754_v3 = vld [vmem:[%s5352_s25 + $0x8] sm:$0xff]  ;;  %v755_v4 = vld [vmem:[%s5352_s25 + $0x10] sm:$0xff]  ;;  %s5134_s7 = sshll.u32 %s5343_s4, 7  ;;  %s5357_s17 = sld [smem:[#allocation50_spill]] }
 0x15e   : > { %v3606_v5 = vpack.c.bf16 %v754_v3, %v753_v2  ;;  %v756_v6 = vld [vmem:[%s5352_s25 + $0x18] sm:$0xff]  ;;  %v757_v8 = vld [vmem:[%s5353_s10] sm:$0xff]  ;;  %v758_v9 = vld [vmem:[%s5353_s10 + $0x8] sm:$0xff] }
 0x15f   : > { %v3609_v7 = vpack.c.bf16 %v756_v6, %v755_v4  ;;  %v3612_v11 = vpack.c.bf16 %v758_v9, %v757_v8  ;;  %v759_v12 = vld [vmem:[%s5353_s10 + $0x10] sm:$0xff]  ;;  %v760_v13 = vld [vmem:[%s5353_s10 + $0x18] sm:$0xff]  ;;  %v761_v15 = vld [vmem:[%s5354_s5] sm:$0xff] }
 0x160   : > { %3607 = vmatpush3.bf16.msra.mxu1 %v3606_v5  ;;  %v3615_v14 = vpack.c.bf16 %v760_v13, %v759_v12  ;;  %v762_v16 = vld [vmem:[%s5354_s5 + $0x8] sm:$0xff]  ;;  %v763_v17 = vld [vmem:[%s5354_s5 + $0x10] sm:$0xff]  ;;  %v764_v19 = vld [vmem:[%s5354_s5 + $0x18] sm:$0xff] }
 0x161   : > { %3608 = vmatprep.subr.bf16.mxu1 %v4304_v0  ;;  %v3618_v18 = vpack.c.bf16 %v762_v16, %v761_v15  ;;  %v3621_v20 = vpack.c.bf16 %v764_v19, %v763_v17 }
 0x163   : > { %3619 = vmatpush3.bf16.msra.mxu0 %v3618_v18  ;;  %s5140_s16 = scalar_lea.hbm %s5357_s17, %s5134_s7 }
 0x164   : > { %3610 = vmatpush3.bf16.msra.mxu1 %v3609_v7  ;;  %3620 = vmatprep.subr.bf16.mxu0 %v4304_v0 }
 0x165   : > { %3611 = vmatprep.subr.bf16.mxu1 %v4304_v0 }
 0x167   : > { %3416 = vmatmul.mubr.msk.f32.vlgmr.msra.gmra.mrb[0].mxu1 %vm769_vm1, %v4843_v10  ;;  %3622 = vmatpush3.bf16.msra.mxu0 %v3621_v20 }
 0x168   : > { %3613 = vmatpush3.bf16.msra.mxu1 %v3612_v11  ;;  %3426 = vmatprep.mubr.msk.f32.mxu1 %vm4305_vm0, %v4306_v1 }
 0x169   : > { %3614 = vmatprep.subr.bf16.mxu1 %v4304_v0  ;;  %3450 = vmatprep.subr.mxu0 %v4306_v1 }
 0x16a   : > { %3438 = vmatmul.mubr.msk.f32.vlgmr.msra.gmra.mrb[0].mxu0 %vm769_vm1, %v4843_v10 }
 0x16b   : > { %3452 = vmatprep.mubr.msk.f32.mxu0 %vm4305_vm0, %v4306_v1 }
 0x16c   : > { %3616 = vmatpush3.bf16.msra.mxu1 %v3615_v14 }
 0x16d   : > { %3440 = vmatprep.subr.mxu1 %v4306_v1 }
 0x16f   : > { %3427 = vmatmul.mubr.msk.f32.vlgmr.msra.gmra.mrb[2].mxu1 %vm769_vm1, %v4843_v10 }
 0x170   : > { %3442 = vmatprep.mubr.msk.f32.mxu1 %vm4305_vm0, %v4306_v1 }
 0x23a   : > { %v839_v21 = vpop.f32.mrb[0].mxu1 }
 0x23b   : > { %v3417_v22 = vpop.f32.mrb[1].mxu1 }
 0x23d   : > { %v4891_v25 = vpop.f32.mrb[0].mxu0 }
 0x23e   : > { %v3439_v26 = vpop.f32.mrb[1].mxu0 }
 0x23f   : > { %v765_v26 = vld [vmem:[#allocation10] sm:$0xff] }
 0x242   : > { %v909_v23 = vpop.f32.mrb[2].mxu1 }
 0x243   : > { %1315 = vrot.lane.b32.xlu1 %v909_v23, %s4307_s1  ;;  %1148 = vrot.lane.b32.xlu0 %v909_v23, %s4308_s29  ;;  %v3428_v24 = vpop.f32.mrb[3].mxu1 }
 0x244   : > { %3441 = vmatpush3.xpose.msk.msra.mxu1 %vm983_vm2, %v909_v23 }
 0x245   : > { %3445 = vmatprep.subr.mxu1 %v4306_v1 }
 0x247   : > { %3443 = vmatmul.mubr.msk.f32.vlgmr.msra.gmra.mrb[4].mxu1 %vm983_vm2, %v839_v21  ;;  %1313 = vrot.lane.b32.xlu1 %v839_v21, %s4307_s1 }
 0x248   : > { %1146 = vrot.lane.b32.xlu0 %v839_v21, %s4308_s29  ;;  %3447 = vmatprep.mubr.msk.f32.mxu1 %vm4305_vm0, %v4306_v1 }
 0x249   : > { %3446 = vmatpush3.msra.mxu1 %v4891_v25 }
 0x24a   : > { %3455 = vmatprep.subr.mxu1 %v4306_v1 }
 0x24b   : > { %1479 = vrot.lane.b32.xlu1 %v839_v21, %s4309_s13 }
 0x24c   : > { %1481 = vrot.lane.b32.xlu0 %v909_v23, %s4309_s13 }
 0x2b5   : > { %v1149_v27 = vpop.permute.xlu0 %1148  ;;  %v1316_v28 = vpop.permute.xlu1 %1315 }
 0x2b6   : > { %3451 = vmatpush3.xpose.msk.msra.mxu0 %vm983_vm2, %v1149_v27  ;;  %v766_v27 = vld [vmem:[#allocation10 + $0x8] sm:$0xff] }
 0x2b7   : > { %3460 = vmatprep.subr.mxu0 %v4306_v1 }
 0x2b9   : > { %v1314_v30 = vpop.permute.xlu1 %1313 }
 0x2ba   : > { %v1147_v29 = vpop.permute.xlu0 %1146 }
 0x2bb   : > { %3453 = vmatmul.mubr.msk.f32.vlgmr.msra.gmra.mrb[2].mxu0 %vm983_vm2, %v1147_v29  ;;  %v767_v29 = vld [vmem:[#allocation10 + $0x10] sm:$0xff] }
 0x2bc   : > { %3461 = vmatpush3.xpose.msk.msra.mxu0 %vm983_vm2, %v1316_v28  ;;  %3462 = vmatprep.mubr.msk.f32.mxu0 %vm4305_vm0, %v4306_v1  ;;  %v3624_v28 = vpack.c.bf16 %v766_v27, %v765_v26 }
 0x2bd   : > { %3470 = vmatprep.subr.mxu0 %v4306_v1  ;;  %v1480_v32 = vpop.permute.xlu1 %1479 }
 0x2be   : > { %v1482_v31 = vpop.permute.xlu0 %1481 }
 0x2bf   : > { %3463 = vmatmul.mubr.msk.f32.vlgmr.msra.gmra.mrb[4].mxu0 %vm983_vm2, %v1314_v30  ;;  %v768_v30 = vld [vmem:[#allocation10 + $0x18] sm:$0xff] }
 0x2c0   : > { %3471 = vmatpush3.xpose.msk.msra.mxu0 %vm983_vm2, %v1482_v31  ;;  %3472 = vmatprep.mubr.msk.f32.mxu0 %vm4305_vm0, %v4306_v1  ;;  %v3627_v31 = vpack.c.bf16 %v768_v30, %v767_v29  ;;  %v1762_v29 = vld [vmem:[%s652_s0] sm:$0xff] }
 0x2c1   : > { %3623 = vmatprep.subr.bf16.mxu0 %v4304_v0  ;;  %vm2071_vm6 = vcmp.gt.f32.partialorder %v1762_v29, 0.5  ;;  %v1776_v29 = vld [vmem:[#allocation16 + $0x8] sm:$0xff] }
 0x2c3   : > { %3473 = vmatmul.mubr.msk.f32.vlgmr.msra.gmra.mrb[6].mxu0 %vm983_vm2, %v1480_v32 }
 0x2c4   : > { %3488 = vmatprep.mubr.msk.f32.mxu0 %vm4305_vm0, %v4306_v1  ;;  %3625 = vmatpush3.bf16.msra.mxu0 %v3624_v28 }
 0x2c5   : > { %3626 = vmatprep.subr.bf16.mxu0 %v4304_v0 }
 0x2c8   : > { %3628 = vmatpush3.bf16.msra.mxu0 %v3627_v31 }
 0x2c9   : > { %3635 = vmatprep.subr.bf16.mxu0 %v4304_v0 }
 0x31a   : > { %v1056_v34 = vpop.f32.mrb[4].mxu1 }
 0x31b   : > { %v1061_v35 = vsel %vm1060_vm3, -1e+09, %v1056_v34  ;;  %v3444_v36 = vpop.f32.mrb[5].mxu1 }
 0x31c   : > { %v1062_v37 = vsel %vm983_vm2, %v1061_v35, -inf }
 0x31d   : > { %1063 = vmax.xlane.f32.xlu0 %v1062_v37 }
 0x38e   : > { %v1220_v38 = vpop.f32.mrb[2].mxu0 }
 0x38f   : > { %v1224_v39 = vsel %vm1060_vm3, -1e+09, %v1220_v38  ;;  %v3454_v40 = vpop.f32.mrb[3].mxu0 }
 0x390   : > { %v1225_v41 = vsel %vm983_vm2, %v1224_v39, -inf }
 0x391   : > { %1226 = vmax.xlane.f32.xlu1 %v1225_v41 }
 0x392   : > { %v1387_v42 = vpop.f32.mrb[4].mxu0 }
 0x393   : > { %v1391_v43 = vsel %vm1060_vm3, -1e+09, %v1387_v42  ;;  %v3464_v44 = vpop.f32.mrb[5].mxu0 }
 0x394   : > { %v1392_v45 = vsel %vm983_vm2, %v1391_v43, -inf }
 0x395   : > { %1393 = vmax.xlane.f32.xlu0 %v1392_v45 }
 0x396   : > { %v1553_v46 = vpop.f32.mrb[6].mxu0 }
 0x397   : > { %v1557_v47 = vsel %vm1060_vm3, -1e+09, %v1553_v46  ;;  %v3474_v48 = vpop.f32.mrb[7].mxu0 }
 0x398   : > { %v1558_v49 = vsel %vm983_vm2, %v1557_v47, -inf  ;;  %v1767_v48 = vld [vmem:[#allocation13] sm:$0xff] }
 0x399   : > { %1559 = vmax.xlane.f32.xlu0 %v1558_v49  ;;  %v1768_v49 = vld [vmem:[#allocation13 + $0x8] sm:$0xff] }
 0x3a2   : > { %1237 = vrot.lane.b32.xlu1 %v4891_v25, %s4308_s29 }
 0x3aa   : > { %v1064_v50 = vpop.xlane.xlu0 %1063 }
 0x3ab   : > { %v1065_v51 = vsub.f32 %v1061_v35, %v1064_v50  ;;  %v3636_v50 = vpack.c.bf16 %v1768_v49, %v1767_v48 }
 0x3ad   : > { %v1066_v52 = vmul.f32 1.442695, %v1065_v51 }
 0x3af   : > { %3814 = vpow2.f32 %v1066_v52 }
 0x3b9   : > { %v3815_v53 = vpop.eup %3814 }
 0x3ba   : > { %v1068_v54 = vsel %vm983_vm2, %v3815_v53, 0.0 }
 0x3c6   : > { %1069 = vadd.xlane.f32.xlu1 %v1068_v54 }
 0x41e   : > { %v1227_v55 = vpop.xlane.xlu1 %1226 }
 0x41f   : > { %v1228_v56 = vsub.f32 %v1224_v39, %v1227_v55 }
 0x421   : > { %v1229_v57 = vmul.f32 1.442695, %v1228_v56  ;;  %v1769_v56 = vld [vmem:[#allocation13 + $0x10] sm:$0xff] }
 0x422   : > { %v1394_v58 = vpop.xlane.xlu0 %1393  ;;  %v1238_v8 = vpop.permute.xlu1 %1237 }
 0x423   : > { %3816 = vpow2.f32 %v1229_v57  ;;  %v1395_v59 = vsub.f32 %v1391_v43, %v1394_v58  ;;  %v751_v58 = vld [vmem:[%s634_s15] sm:$0xff] }
 0x425   : > { %v1396_v60 = vmul.f32 1.442695, %v1395_v59  ;;  %v1763_v59 = vld [vmem:[#allocation11] sm:$0xff] }
 0x426   : > { %v1560_v61 = vpop.xlane.xlu0 %1559 }
 0x427   : > { %3818 = vpow2.f32 %v1396_v60  ;;  %v1561_v62 = vsub.f32 %v1557_v47, %v1560_v61  ;;  %v1764_v60 = vld [vmem:[#allocation11 + $0x8] sm:$0xff] }
 0x428   : > { %v3630_v61 = vpack.c.bf16 %v1764_v60, %v1763_v59 }
 0x429   : > { %v1562_v63 = vmul.f32 1.442695, %v1561_v62  ;;  %v1765_v62 = vld [vmem:[#allocation11 + $0x10] sm:$0xff] }
 0x42b   : > { %3820 = vpow2.f32 %v1562_v63  ;;  %v1766_v63 = vld [vmem:[#allocation11 + $0x18] sm:$0xff] }
 0x42d   : > { %v3817_v2 = vpop.eup %3816 }
 0x42e   : > { %v1231_v3 = vsel %vm983_vm2, %v3817_v2, 0.0 }
 0x42f   : > { %1232 = vadd.xlane.f32.xlu0 %v1231_v3 }
 0x431   : > { %v3819_v4 = vpop.eup %3818 }
 0x432   : > { %v1398_v5 = vsel %vm983_vm2, %v3819_v4, 0.0 }
 0x433   : > { %1399 = vadd.xlane.f32.xlu1 %v1398_v5 }
 0x435   : > { %v3821_v6 = vpop.eup %3820 }
 0x436   : > { %v1564_v7 = vsel %vm983_vm2, %v3821_v6, 0.0 }
 0x437   : > { %1565 = vadd.xlane.f32.xlu0 %v1564_v7 }
 0x444   : > { %1569 = vrot.lane.b32.xlu1 %v4891_v25, %s4309_s13 }
 0x44d   : > { %1403 = vrot.lane.b32.xlu0 %v4891_v25, %s4307_s1 }
 0x453   : > { %v1070_v9 = vpop.xlane.xlu1 %1069 }
 0x454   : > { %3822 = vrcp.f32 %v1070_v9 }
 0x45e   : > { %v3823_v11 = vpop.eup %3822 }
 0x45f   : > { %v4930_v12 = vmul.f32 %v3823_v11, %v3815_v53  ;;  %v1771_v11 = vld [vmem:[#allocation14] sm:$0xff] }
 0x461   : > { %3448 = vmatmul.mubr.msk.f32.vlgmr.msra.gmra.mrb[6].mxu1 %vm983_vm2, %v4930_v12 }
 0x462   : > { %3456 = vmatpush3.msra.mxu1 %v1238_v8  ;;  %3457 = vmatprep.mubr.msk.f32.mxu1 %vm4305_vm0, %v4306_v1 }
 0x463   : > { %3465 = vmatprep.subr.mxu1 %v4306_v1 }
 0x4bc   : > { %v1233_v13 = vpop.xlane.xlu0 %1232 }
 0x4bd   : > { %3824 = vrcp.f32 %v1233_v13  ;;  %v1772_v13 = vld [vmem:[#allocation14 + $0x8] sm:$0xff] }
 0x4c0   : > { %v1400_v14 = vpop.xlane.xlu1 %1399 }
 0x4c1   : > { %3826 = vrcp.f32 %v1400_v14  ;;  %v1773_v14 = vld [vmem:[#allocation14 + $0x10] sm:$0xff] }
 0x4c4   : > { %v1566_v15 = vpop.xlane.xlu0 %1565  ;;  %v1570_v21 = vpop.permute.xlu1 %1569 }
 0x4c5   : > { %3828 = vrcp.f32 %v1566_v15  ;;  %v3642_v15 = vpack.c.bf16 %v1772_v13, %v1771_v11 }
 0x4c7   : > { %v3825_v16 = vpop.eup %3824 }
 0x4c8   : > { %v4937_v17 = vmul.f32 %v3825_v16, %v3817_v2  ;;  %v1404_v18 = vpop.permute.xlu0 %1403  ;;  %v3633_v2 = vpack.c.bf16 %v1766_v63, %v1765_v62  ;;  %v1774_v16 = vld [vmem:[#allocation14 + $0x18] sm:$0xff] }
 0x4ca   : > { %3458 = vmatmul.mubr.msk.f32.vlgmr.msra.gmra.mrb[8].mxu1 %vm983_vm2, %v4937_v17 }
 0x4cb   : > { %v3827_v19 = vpop.eup %3826  ;;  %3466 = vmatpush3.msra.mxu1 %v1404_v18  ;;  %3467 = vmatprep.mubr.msk.f32.mxu1 %vm4305_vm0, %v4306_v1  ;;  %v3645_v18 = vpack.c.bf16 %v1774_v16, %v1773_v14 }
 0x4cc   : > { %v4943_v20 = vmul.f32 %v3827_v19, %v3819_v4  ;;  %3475 = vmatprep.subr.mxu1 %v4306_v1 }
 0x4ce   : > { %3468 = vmatmul.mubr.msk.f32.vlgmr.msra.gmra.mrb[10].mxu1 %vm983_vm2, %v4943_v20 }
 0x4cf   : > { %v3829_v22 = vpop.eup %3828  ;;  %3476 = vmatpush3.msra.mxu1 %v1570_v21  ;;  %3477 = vmatprep.mubr.msk.f32.mxu1 %vm4305_vm0, %v4306_v1 }
 0x4d0   : > { %v4950_v23 = vmul.f32 %v3829_v22, %v3821_v6  ;;  %3629 = vmatprep.subr.bf16.mxu1 %v4304_v0 }
 0x4d2   : > { %3478 = vmatmul.mubr.msk.f32.vlgmr.msra.gmra.mrb[12].mxu1 %vm983_vm2, %v4950_v23 }
 0x4d3   : > { %3499 = vmatprep.mubr.msk.f32.mxu1 %vm4305_vm0, %v4306_v1  ;;  %3631 = vmatpush3.bf16.msra.mxu1 %v3630_v61 }
 0x4d4   : > { %3632 = vmatprep.subr.bf16.mxu1 %v4304_v0 }
 0x4d7   : > { %3634 = vmatpush3.bf16.msra.mxu1 %v3633_v2 }
 0x4d8   : > { %3641 = vmatprep.subr.bf16.mxu1 %v4304_v0 }
 0x534   : > { %v1142_v24 = vpop.f32.mrb[6].mxu1 }
 0x535   : > { %v3449_v25 = vpop.f32.mrb[7].mxu1 }
 0x59d   : > { %v1309_v32 = vpop.f32.mrb[8].mxu1 }
 0x59e   : > { %1646 = vrot.lane.b32.xlu1 %v1309_v32, %s4310_s9  ;;  %v3459_v33 = vpop.f32.mrb[9].mxu1 }
 0x5a1   : > { %v1475_v34 = vpop.f32.mrb[10].mxu1 }
 0x5a2   : > { %1650 = vrot.lane.b32.xlu0 %v1475_v34, %s4311_s20  ;;  %v3469_v35 = vpop.f32.mrb[11].mxu1 }
 0x5a5   : > { %v1641_v36 = vpop.f32.mrb[12].mxu1 }
 0x5a6   : > { %1654 = vrot.lane.b32.xlu1 %v1641_v36, %s4312_s14  ;;  %v3479_v37 = vpop.f32.mrb[13].mxu1 }
 0x610   : > { %v1647_v38 = vpop.permute.xlu1 %1646 }
 0x611   : > { %v1657_v40 = vsel %vm983_vm2, %v1142_v24, %v1647_v38 }
 0x614   : > { %v1651_v39 = vpop.permute.xlu0 %1650 }
 0x615   : > { %v1659_v41 = vsel %vm1658_vm4, %v1657_v40, %v1651_v39 }
 0x618   : > { %v1655_v42 = vpop.permute.xlu1 %1654 }
 0x619   : > { %v1661_v43 = vsel %vm1660_vm5, %v1659_v41, %v1655_v42 }
 0x61a   : > { %3489 = vmatmul.mubr.msk.f32.vlgmr.msra.gmra.mrb[8].mxu0 %vm769_vm1, %v1661_v43 }
 0x61b   : > { %3510 = vmatprep.mubr.msk.f32.mxu0 %vm4305_vm0, %v4306_v1  ;;  %3637 = vmatpush3.bf16.msra.mxu0 %v3636_v50 }
 0x61c   : > { %3638 = vmatprep.subr.bf16.mxu0 %v4304_v0 }
 0x6ed   : > { %v1743_v44 = vpop.f32.mrb[8].mxu0 }
 0x6ee   : > { %v1744_v45 = vadd.f32 %v1743_v44, %v4843_v10  ;;  %v3490_v46 = vpop.f32.mrb[9].mxu0  ;;  %v1770_v10 = vld [vmem:[#allocation13 + $0x18] sm:$0xff] }
 0x6ef   : > { %v3639_v57 = vpack.c.bf16 %v1770_v10, %v1769_v56 }
 0x6f0   : > { %v1747_v47 = vsel %vm769_vm1, %v1744_v45, 0.0 }
 0x6f1   : > { %1748 = vadd.xlane.f32.xlu0 %v1747_v47  ;;  %3640 = vmatpush3.bf16.msra.mxu0 %v3639_v57 }
 0x6f2   : > { %3524 = vmatprep.subr.mxu0 %v4306_v1 }
 0x6f4   : > { %3511 = vmatmul.mubr.msk.f32.vlgmr.msra.gmra.mrb[10].mxu0 %vm769_vm1, %v751_v58 }
 0x6f5   : > { %3526 = vmatprep.mubr.msk.f32.mxu0 %vm4305_vm0, %v4306_v1 }
 0x77e   : > { %v1749_v51 = vpop.xlane.xlu0 %1748 }
 0x77f   : > { %v1751_v52 = vmul.f32 0.03125, %v1749_v51 }
 0x781   : > { %v1752_v53 = vsub.f32 %v1744_v45, %v1751_v52 }
 0x783   : > { %v1753_v54 = vmul.f32 %v1752_v53, %v1752_v53 }
 0x785   : > { %v1754_v55 = vsel %vm769_vm1, %v1753_v54, 0.0 }
 0x786   : > { %1755 = vadd.xlane.f32.xlu1 %v1754_v55 }
 0x7c7   : > { %v1921_v8 = vpop.f32.mrb[10].mxu0 }
 0x7c8   : > { %2159 = vrot.lane.b32.xlu0 %v1921_v8, %s4308_s29  ;;  %v3512_v9 = vpop.f32.mrb[11].mxu0  ;;  %3525 = vmatpush3.xpose.msk.msra.mxu0 %vm983_vm2, %v1921_v8 }
 0x7c9   : > { %3534 = vmatprep.subr.mxu0 %v4306_v1 }
 0x7cc   : > { %2326 = vrot.lane.b32.xlu0 %v1921_v8, %s4307_s1 }
 0x7d0   : > { %2492 = vrot.lane.b32.xlu0 %v1921_v8, %s4309_s13 }
 0x813   : > { %v1756_v3 = vpop.xlane.xlu1 %1755 }
 0x814   : > { %v1757_v4 = vmul.f32 0.03125, %v1756_v3 }
 0x816   : > { %v1758_v5 = vadd.f32 1e-05, %v1757_v4 }
 0x818   : > { %3830 = vrsqrt.f32 %v1758_v5 }
 0x822   : > { %v3831_v6 = vpop.eup %3830 }
 0x823   : > { %v4980_v7 = vmul.f32 %v3831_v6, %v1752_v53 }
 0x825   : > { %3500 = vmatmul.mubr.msk.f32.vlgmr.msra.gmra.mrb[14].mxu1 %vm769_vm1, %v4980_v7 }
 0x826   : > { %3521 = vmatprep.mubr.msk.f32.mxu1 %vm4305_vm0, %v4306_v1  ;;  %3643 = vmatpush3.bf16.msra.mxu1 %v3642_v15 }
 0x827   : > { %3644 = vmatprep.subr.bf16.mxu1 %v4304_v0 }
 0x82a   : > { %3646 = vmatpush3.bf16.msra.mxu1 %v3645_v18 }
 0x82b   : > { %3529 = vmatprep.subr.mxu1 %v4306_v1 }
 0x82d   : > { %3522 = vmatmul.mubr.msk.f32.vlgmr.msra.gmra.mrb[16].mxu1 %vm769_vm1, %v751_v58 }
 0x82e   : > { %3531 = vmatprep.mubr.msk.f32.mxu1 %vm4305_vm0, %v4306_v1 }
 0x83a   : > { %v2160_v22 = vpop.permute.xlu0 %2159 }
 0x83e   : > { %v2327_v24 = vpop.permute.xlu0 %2326 }
 0x842   : > { %v2493_v27 = vpop.permute.xlu0 %2492 }
 0x8f8   : > { %v1848_v19 = vpop.f32.mrb[14].mxu1 }
 0x8f9   : > { %2157 = vrot.lane.b32.xlu1 %v1848_v19, %s4308_s29  ;;  %v3501_v21 = vpop.f32.mrb[15].mxu1  ;;  %3527 = vmatmul.mubr.msk.f32.vlgmr.msra.gmra.mrb[12].mxu0 %vm983_vm2, %v1848_v19 }
 0x8fa   : > { %3535 = vmatpush3.xpose.msk.msra.mxu0 %vm983_vm2, %v2160_v22  ;;  %3536 = vmatprep.mubr.msk.f32.mxu0 %vm4305_vm0, %v4306_v1 }
 0x8fb   : > { %3544 = vmatprep.subr.mxu0 %v4306_v1 }
 0x8fd   : > { %2324 = vrot.lane.b32.xlu1 %v1848_v19, %s4307_s1 }
 0x900   : > { %v1991_v34 = vpop.f32.mrb[16].mxu1 }
 0x901   : > { %2490 = vrot.lane.b32.xlu1 %v1848_v19, %s4309_s13  ;;  %v3523_v35 = vpop.f32.mrb[17].mxu1  ;;  %3530 = vmatpush3.msra.mxu1 %v1991_v34 }
 0x902   : > { %3539 = vmatprep.subr.mxu1 %v4306_v1 }
 0x96b   : > { %v2158_v25 = vpop.permute.xlu1 %2157 }
 0x96c   : > { %3537 = vmatmul.mubr.msk.f32.vlgmr.msra.gmra.mrb[14].mxu0 %vm983_vm2, %v2158_v25 }
 0x96d   : > { %3545 = vmatpush3.xpose.msk.msra.mxu0 %vm983_vm2, %v2327_v24  ;;  %3546 = vmatprep.mubr.msk.f32.mxu0 %vm4305_vm0, %v4306_v1 }
 0x96e   : > { %3554 = vmatprep.subr.mxu0 %v4306_v1 }
 0x96f   : > { %v2325_v26 = vpop.permute.xlu1 %2324 }
 0x970   : > { %3547 = vmatmul.mubr.msk.f32.vlgmr.msra.gmra.mrb[16].mxu0 %vm983_vm2, %v2325_v26 }
 0x971   : > { %3555 = vmatpush3.xpose.msk.msra.mxu0 %vm983_vm2, %v2493_v27  ;;  %3556 = vmatprep.mubr.msk.f32.mxu0 %vm4305_vm0, %v4306_v1 }
 0x972   : > { %3647 = vmatprep.subr.bf16.mxu0 %v4304_v0 }
 0x973   : > { %v2491_v28 = vpop.permute.xlu1 %2490 }
 0x974   : > { %3557 = vmatmul.mubr.msk.f32.vlgmr.msra.gmra.mrb[18].mxu0 %vm983_vm2, %v2491_v28  ;;  %v1775_v28 = vld [vmem:[#allocation16] sm:$0xff] }
 0x975   : > { %3572 = vmatprep.mubr.msk.f32.mxu0 %vm4305_vm0, %v4306_v1 }
 0x9cc   : > { %v2067_v30 = vpop.f32.mrb[12].mxu0 }
 0x9cd   : > { %v2072_v31 = vsel %vm2071_vm6, -1e+09, %v2067_v30  ;;  %v3528_v32 = vpop.f32.mrb[13].mxu0  ;;  %v3648_v30 = vpack.c.bf16 %v1776_v29, %v1775_v28 }
 0x9ce   : > { %v2073_v33 = vsel %vm983_vm2, %v2072_v31, -inf  ;;  %v1778_v32 = vld [vmem:[#allocation16 + $0x18] sm:$0xff] }
 0x9cf   : > { %2074 = vmax.xlane.f32.xlu0 %v2073_v33  ;;  %3649 = vmatpush3.bf16.msra.mxu0 %v3648_v30 }
 0x9d0   : > { %3650 = vmatprep.subr.bf16.mxu0 %v4304_v0 }
 0xa3f   : > { %v2231_v36 = vpop.f32.mrb[14].mxu0 }
 0xa40   : > { %v2235_v37 = vsel %vm2071_vm6, -1e+09, %v2231_v36  ;;  %v3538_v38 = vpop.f32.mrb[15].mxu0 }
 0xa41   : > { %v2236_v39 = vsel %vm983_vm2, %v2235_v37, -inf }
 0xa42   : > { %2237 = vmax.xlane.f32.xlu1 %v2236_v39 }
 0xa43   : > { %v2398_v40 = vpop.f32.mrb[16].mxu0 }
 0xa44   : > { %v2402_v41 = vsel %vm2071_vm6, -1e+09, %v2398_v40  ;;  %v3548_v42 = vpop.f32.mrb[17].mxu0 }
 0xa45   : > { %v2403_v43 = vsel %vm983_vm2, %v2402_v41, -inf }
 0xa46   : > { %2404 = vmax.xlane.f32.xlu0 %v2403_v43 }
 0xa47   : > { %v2564_v44 = vpop.f32.mrb[18].mxu0 }
 0xa48   : > { %v2568_v45 = vsel %vm2071_vm6, -1e+09, %v2564_v44  ;;  %v3558_v46 = vpop.f32.mrb[19].mxu0 }
 0xa49   : > { %v2569_v47 = vsel %vm983_vm2, %v2568_v45, -inf }
 0xa4a   : > { %2570 = vmax.xlane.f32.xlu0 %v2569_v47 }
 0xa53   : > { %2248 = vrot.lane.b32.xlu1 %v1991_v34, %s4308_s29  ;;  %s2950_s29 = scalar_lea.sflag [#allocation21], %s4785_s28 }
 0xa5c   : > { %v2075_v48 = vpop.xlane.xlu0 %2074 }
 0xa5d   : > { %v2076_v49 = vsub.f32 %v2072_v31, %v2075_v48  ;;  %v1777_v31 = vld [vmem:[#allocation16 + $0x10] sm:$0xff] }
 0xa5e   : > { %v3651_v33 = vpack.c.bf16 %v1778_v32, %v1777_v31 }
 0xa5f   : > { %v2077_v50 = vmul.f32 1.442695, %v2076_v49 }
 0xa60   : > { %3652 = vmatpush3.bf16.msra.mxu0 %v3651_v33 }
 0xa61   : > { %3832 = vpow2.f32 %v2077_v50  ;;  %3659 = vmatprep.subr.bf16.mxu0 %v4304_v0 }
 0xa6b   : > { %v3833_v51 = vpop.eup %3832 }
 0xa6c   : > { %v2079_v52 = vsel %vm983_vm2, %v3833_v51, 0.0 }
 0xa77   : > { %2080 = vadd.xlane.f32.xlu1 %v2079_v52 }
 0xacf   : > { %v2238_v53 = vpop.xlane.xlu1 %2237 }
 0xad0   : > { %v2239_v54 = vsub.f32 %v2235_v37, %v2238_v53 }
 0xad2   : > { %v2240_v55 = vmul.f32 1.442695, %v2239_v54 }
 0xad3   : > { %v2405_v56 = vpop.xlane.xlu0 %2404  ;;  %v2249_v5 = vpop.permute.xlu1 %2248 }
 0xad4   : > { %3834 = vpow2.f32 %v2240_v55  ;;  %v2406_v10 = vsub.f32 %v2402_v41, %v2405_v56  ;;  %v2771_v55 = vld [vmem:[#allocation17 + $0x8] sm:$0xff]  ;;  %v2772_v56 = vld [vmem:[#allocation17 + $0x10] sm:$0xff] }
 0xad6   : > { %v2407_v57 = vmul.f32 1.442695, %v2406_v10  ;;  %v2773_v10 = vld [vmem:[#allocation17 + $0x18] sm:$0xff] }
 0xad7   : > { %v2571_v58 = vpop.xlane.xlu0 %2570 }
 0xad8   : > { %3836 = vpow2.f32 %v2407_v57  ;;  %v2572_v59 = vsub.f32 %v2568_v45, %v2571_v58  ;;  %v3657_v57 = vpack.c.bf16 %v2773_v10, %v2772_v56  ;;  %v2848_v58 = vld [vmem:[%s5355_s18] sm:$0xff] }
 0xada   : > { %v2573_v60 = vmul.f32 1.442695, %v2572_v59 }
 0xadc   : > { %3838 = vpow2.f32 %v2573_v60  ;;  %v2851_v60 = vld [vmem:[%s5355_s18 + $0x18] sm:$0xff] }
 0xade   : > { %v3835_v61 = vpop.eup %3834 }
 0xadf   : > { %v2242_v62 = vsel %vm983_vm2, %v3835_v61, 0.0 }
 0xae0   : > { %2243 = vadd.xlane.f32.xlu0 %v2242_v62  ;;  %v2852_v62 = vld [vmem:[%s5355_s18 + $0x20] sm:$0xff] }
 0xae2   : > { %v3837_v63 = vpop.eup %3836 }
 0xae3   : > { %v2409_v2 = vsel %vm983_vm2, %v3837_v63, 0.0 }
 0xae4   : > { %2410 = vadd.xlane.f32.xlu1 %v2409_v2 }
 0xae6   : > { %v3839_v3 = vpop.eup %3838 }
 0xae7   : > { %v2575_v4 = vsel %vm983_vm2, %v3839_v3, 0.0 }
 0xae8   : > { %2576 = vadd.xlane.f32.xlu0 %v2575_v4 }
 0xaf5   : > { %2580 = vrot.lane.b32.xlu1 %v1991_v34, %s4309_s13 }
 0xafe   : > { %2414 = vrot.lane.b32.xlu0 %v1991_v34, %s4307_s1 }
 0xb04   : > { %v2081_v6 = vpop.xlane.xlu1 %2080 }
 0xb05   : > { %3840 = vrcp.f32 %v2081_v6 }
 0xb0f   : > { %v3841_v8 = vpop.eup %3840 }
 0xb10   : > { %v5035_v9 = vmul.f32 %v3841_v8, %v3833_v51 }
 0xb12   : > { %3532 = vmatmul.mubr.msk.f32.vlgmr.msra.gmra.mrb[18].mxu1 %vm983_vm2, %v5035_v9 }
 0xb13   : > { %3540 = vmatpush3.msra.mxu1 %v2249_v5  ;;  %3541 = vmatprep.mubr.msk.f32.mxu1 %vm4305_vm0, %v4306_v1 }
 0xb14   : > { %3549 = vmatprep.subr.mxu1 %v4306_v1 }
 0xb6d   : > { %v2244_v11 = vpop.xlane.xlu0 %2243 }
 0xb6e   : > { %3842 = vrcp.f32 %v2244_v11  ;;  %v2854_v11 = vld [vmem:[%s5355_s18 + $0x30] sm:$0xff] }
 0xb71   : > { %v2411_v13 = vpop.xlane.xlu1 %2410 }
 0xb72   : > { %3844 = vrcp.f32 %v2411_v13  ;;  %v2855_v13 = vld [vmem:[%s5355_s18 + $0x38] sm:$0xff] }
 0xb75   : > { %v2577_v14 = vpop.xlane.xlu0 %2576  ;;  %v2581_v22 = vpop.permute.xlu1 %2580 }
 0xb76   : > { %3846 = vrcp.f32 %v2577_v14  ;;  %v3669_v14 = vpack.c.bf16 %v2855_v13, %v2854_v11 }
 0xb78   : > { %v3843_v15 = vpop.eup %3842 }
 0xb79   : > { %v5042_v16 = vmul.f32 %v3843_v15, %v3835_v61  ;;  %v2415_v18 = vpop.permute.xlu0 %2414 }
 0xb7b   : > { %3542 = vmatmul.mubr.msk.f32.vlgmr.msra.gmra.mrb[20].mxu1 %vm983_vm2, %v5042_v16 }
 0xb7c   : > { %v3845_v19 = vpop.eup %3844  ;;  %3550 = vmatpush3.msra.mxu1 %v2415_v18  ;;  %3551 = vmatprep.mubr.msk.f32.mxu1 %vm4305_vm0, %v4306_v1 }
 0xb7d   : > { %v2413_v21 = vmul.f32 %v3845_v19, %v3837_v63  ;;  %3559 = vmatprep.subr.mxu1 %v4306_v1  ;;  %v2853_v63 = vld [vmem:[%s5355_s18 + $0x28] sm:$0xff] }
 0xb7e   : > { %v3666_v2 = vpack.c.bf16 %v2853_v63, %v2852_v62 }
 0xb7f   : > { %3552 = vmatmul.mubr.msk.f32.vlgmr.msra.gmra.mrb[22].mxu1 %vm983_vm2, %v2413_v21 }
 0xb80   : > { %v3847_v24 = vpop.eup %3846  ;;  %3560 = vmatpush3.msra.mxu1 %v2581_v22  ;;  %3561 = vmatprep.mubr.msk.f32.mxu1 %vm4305_vm0, %v4306_v1 }
 0xb81   : > { %v5052_v25 = vmul.f32 %v3847_v24, %v3839_v3  ;;  %3653 = vmatprep.subr.bf16.mxu1 %v4304_v0 }
 0xb83   : > { %3562 = vmatmul.mubr.msk.f32.vlgmr.msra.gmra.mrb[24].mxu1 %vm983_vm2, %v5052_v25 }
 0xb84   : > { %3583 = vmatprep.mubr.msk.f32.mxu1 %vm4305_vm0, %v4306_v1 }
 0xbe5   : > { %v2153_v26 = vpop.f32.mrb[18].mxu1 }
 0xbe6   : > { %v3533_v27 = vpop.f32.mrb[19].mxu1 }
 0xc4e   : > { %v2320_v34 = vpop.f32.mrb[20].mxu1 }
 0xc4f   : > { %2657 = vrot.lane.b32.xlu1 %v2320_v34, %s4310_s9  ;;  %v3543_v35 = vpop.f32.mrb[21].mxu1 }
 0xc52   : > { %v2486_v36 = vpop.f32.mrb[22].mxu1 }
 0xc53   : > { %2661 = vrot.lane.b32.xlu0 %v2486_v36, %s4311_s20  ;;  %v3553_v37 = vpop.f32.mrb[23].mxu1 }
 0xc56   : > { %v2652_v38 = vpop.f32.mrb[24].mxu1 }
 0xc57   : > { %2665 = vrot.lane.b32.xlu1 %v2652_v38, %s4312_s14  ;;  %v3563_v39 = vpop.f32.mrb[25].mxu1 }
 0xcc1   : > { %v2658_v40 = vpop.permute.xlu1 %2657 }
 0xcc2   : > { %v2668_v42 = vsel %vm983_vm2, %v2153_v26, %v2658_v40 }
 0xcc5   : > { %v2662_v41 = vpop.permute.xlu0 %2661 }
 0xcc6   : > { %v2669_v43 = vsel %vm1658_vm4, %v2668_v42, %v2662_v41 }
 0xcc9   : > { %v2666_v44 = vpop.permute.xlu1 %2665 }
 0xcca   : > { %v2670_v45 = vsel %vm1660_vm5, %v2669_v43, %v2666_v44 }
 0xccb   : > { %3573 = vmatmul.mubr.msk.f32.vlgmr.msra.gmra.mrb[20].mxu0 %vm769_vm1, %v2670_v45 }
 0xccc   : > { %3602 = vmatprep.mubr.msk.f32.mxu0 %vm4305_vm0, %v4306_v1  ;;  %v2770_v1 = vld [vmem:[#allocation17] sm:$0xff] }
 0xd9e   : > { %v2752_v46 = vpop.f32.mrb[20].mxu0 }
 0xd9f   : > { %v2753_v47 = vadd.f32 %v2752_v46, %v4980_v7  ;;  %v3574_v48 = vpop.f32.mrb[21].mxu0  ;;  %v3654_v7 = vpack.c.bf16 %v2771_v55, %v2770_v1 }
 0xda1   : > { %v2756_v49 = vsel %vm769_vm1, %v2753_v47, 0.0  ;;  %3655 = vmatpush3.bf16.msra.mxu1 %v3654_v7 }
 0xda2   : > { %2757 = vadd.xlane.f32.xlu0 %v2756_v49  ;;  %3656 = vmatprep.subr.bf16.mxu1 %v4304_v0 }
 0xda5   : > { %3658 = vmatpush3.bf16.msra.mxu1 %v3657_v57 }
 0xe2f   : > { %v2758_v50 = vpop.xlane.xlu0 %2757 }
 0xe30   : > { %v2759_v51 = vmul.f32 0.03125, %v2758_v50 }
 0xe32   : > { %v2760_v52 = vsub.f32 %v2753_v47, %v2759_v51 }
 0xe34   : > { %v2761_v53 = vmul.f32 %v2760_v52, %v2760_v52 }
 0xe36   : > { %v2762_v54 = vsel %vm769_vm1, %v2761_v53, 0.0 }
 0xe37   : > { %2763 = vadd.xlane.f32.xlu1 %v2762_v54 }
 0xe48   : > { %1665 = vrot.lane.b32.xlu1 %v4943_v20, %s4311_s20  ;;  %v2849_v20 = vld [vmem:[%s5355_s18 + $0x8] sm:$0xff] }
 0xe49   : > { %v3660_v59 = vpack.c.bf16 %v2849_v20, %v2848_v58 }
 0xe4b   : > { %3661 = vmatpush3.bf16.msra.mxu0 %v3660_v59 }
 0xe4c   : > { %1668 = vrot.lane.b32.xlu1 %v4950_v23, %s4312_s14  ;;  %v2850_v23 = vld [vmem:[%s5355_s18 + $0x10] sm:$0xff]  ;;  %3662 = vmatprep.subr.bf16.mxu0 %v4304_v0 }
 0xe4d   : > { %v3663_v61 = vpack.c.bf16 %v2851_v60, %v2850_v23 }
 0xe4f   : > { %3664 = vmatpush3.bf16.msra.mxu0 %v3663_v61 }
 0xe50   : > { %2674 = vrot.lane.b32.xlu1 %v2413_v21, %s4311_s20  ;;  %3665 = vmatprep.subr.bf16.mxu0 %v4304_v0  ;;  %s4313_s20 = smov [#allocation20]  }
 0xe51   : > { %s4144_s15 = sshll.u32 %s4313_s20, 4  ;;  %s4145_s15 = int_to_ptr.vmem [resolvable:$false] %s4144_s15 }
 0xe52   : > { %s4146_s0 = scalar_lea.vmem %s4145_s15, 256 }
 0xe53   : > { %3667 = vmatpush3.bf16.msra.mxu0 %v3666_v2 }
 0xe54   : > { %3668 = vmatprep.subr.bf16.mxu0 %v4304_v0 }
 0xe57   : > { %3670 = vmatpush3.bf16.msra.mxu0 %v3669_v14 }
 0xec4   : > { %v2764_v3 = vpop.xlane.xlu1 %2763 }
 0xec5   : > { %v2765_v4 = vmul.f32 0.03125, %v2764_v3 }
 0xec7   : > { %v2766_v5 = vadd.f32 1e-05, %v2765_v4 }
 0xec8   : > { %v1666_v26 = vpop.permute.xlu1 %1665 }
 0xec9   : > { %3848 = vrsqrt.f32 %v2766_v5 }
 0xecc   : > { %v1669_v31 = vpop.permute.xlu1 %1668 }
 0xed0   : > { %v2675_v35 = vpop.permute.xlu1 %2674 }
 0xed3   : > { %v3849_v6 = vpop.eup %3848 }
 0xed4   : > { %v2768_v8 = vmul.f32 %v3849_v6, %v2760_v52 }
 0xed6   : > { %3584 = vmatmul.mubr.msk.f32.vlgmr.msra.gmra.mrb[26].mxu1 %vm769_vm1, %v2768_v8 }
 0xfa9   : > { %v2843_v15 = vpop.f32.mrb[26].mxu1 }
 0xfaa   : > { %v2847_v0 = vmax.f32 %v2843_v15, 0.0  ;;  %v3585_v18 = vpop.f32.mrb[27].mxu1 }
 0xfac   : > { %3603 = vmatmul.mubr.msk.f32.vlgmr.msra.gmra.mrb[22].mxu0 %vm2856_vm7, %v2847_v0 }
0x107f   : > { %v2926_v19 = vpop.f32.mrb[22].mxu0 }
0x1080   : > { %v2927_v21 = vadd.f32 %v2926_v19, %v2768_v8  ;;  %v3604_v22 = vpop.f32.mrb[23].mxu0 }
0x1082   : > { %v2930_v24 = vsel %vm769_vm1, %v2927_v21, 0.0 }
0x1083   : > { %2931 = vadd.xlane.f32.xlu0 %v2930_v24 }
0x1099   : > { %1662 = vrot.lane.b32.xlu0 %v4937_v17, %s4310_s9 }
0x109d   : > { %2671 = vrot.lane.b32.xlu0 %v5042_v16, %s4310_s9  ;;  %s742_s9 = scalar_lea.vmem [#allocation20], %s4776_s26 }
0x109e   : > { %s2981_s1 = sshll.u32 %s742_s9, 4  ;;  %s2982_s1 = int_to_ptr.vmem [resolvable:$true] %s2981_s1 }
0x109f   : > { %s4140_s13 = scalar_lea.vmem %s2982_s1, 128  ;;  %p4147_p5 = scmp.lt.s32.totalorder %s2982_s1, %s4145_s15 }
0x10a0   : > { %p4141_p8 = scmp.ne.s32.totalorder %s2982_s1, %s4140_s13  ;;  %p4148_p3 = scmp.lt.s32.totalorder %s4146_s0, %s4140_s13 }
0x10a1   : > { %2677 = vrot.lane.b32.xlu0 %v5052_v25, %s4312_s14  ;;  %s5356_s14 = sld [smem:[#allocation37_spill]] }
0x10a2   : > { %p4149_p13 = por %p4148_p3, %p4147_p5 }
0x10a7   : > { %p5358_p7 = scmp.ne.s32.totalorder %s5356_s14, 0 }
0x10a9   : > { %p4142_p9 = pnand %p4141_p8, %p5358_p7 }
0x10ab   : > { %p4143_p11 = pneg %p4142_p9 }
0x10ad   : > { %p4150_p6 = pnand %p4149_p13, %p4143_p11 }
0x1110   : > { %v2932_v27 = vpop.xlane.xlu0 %2931 }
0x1111   : > { %v2933_v28 = vmul.f32 0.03125, %v2932_v27 }
0x1113   : > { %v5114_v29 = vsub.f32 %v2927_v21, %v2933_v28 }
0x1114   : > { %v1663_v30 = vpop.permute.xlu0 %1662 }
0x1115   : > { %v1671_v32 = vsel %vm983_vm2, %v4930_v12, %v1663_v30  ;;  %v2935_v17 = vmul.f32 %v5114_v29, %v5114_v29 }
0x1116   : > { %v1672_v16 = vsel %vm1658_vm4, %v1671_v32, %v1666_v26 }
0x1117   : > { %v1673_v25 = vsel %vm1660_vm5, %v1672_v16, %v1669_v31  ;;  %v2936_v33 = vsel %vm769_vm1, %v2935_v17, 0.0 }
0x1118   : > { %2937 = vadd.xlane.f32.xlu1 %v2936_v33  ;;  %v2672_v34 = vpop.permute.xlu0 %2671  ;;  %1761 = vst.msk [vmem:[%s742_s9] sm:$0xff] %vm769_vm1, %v1673_v25 }
0x1119   : > { %v2680_v12 = vsel %vm983_vm2, %v5035_v9, %v2672_v34 }
0x111a   : > { %v2681_v36 = vsel %vm1658_vm4, %v2680_v12, %v2675_v35 }
0x111c   : > { %v2678_v37 = vpop.permute.xlu0 %2677 }
0x111d   : > { %v2682_v38 = vsel %vm1660_vm5, %v2681_v36, %v2678_v37 }
0x111e   : > { %2769 = vst.msk [vmem:[%s749_s21] sm:$0xff] %vm769_vm1, %v2682_v38 }
0x111f   : > { %4153 = shalt.err (!%p4150_p6)
}
0x1120   : > { %s4154_s4 = scalar_lea.hbm %s5140_s16, 128  ;;  %s4158_s30 = scalar_lea.hbm %s5357_s17, 256 }
0x1121   : > { %p4155_p2 = scmp.ne.s32.totalorder %s5140_s16, %s4154_s4  ;;  %p4159_p4 = scmp.lt.u32.totalorder %s5140_s16, %s5357_s17 }
0x1122   : > { %p4160_p10 = scmp.lt.u32.totalorder %s4158_s30, %s4154_s4  ;;  %p4162_p8 = scmp.lt.u32.totalorder %s4154_s4, %s5140_s16 }
0x1123   : > { %p4156_p0 = pnand %p4155_p2, %p5358_p7 }
0x1124   : > { %p4161_p12 = por %p4160_p10, %p4159_p4 }
0x1125   : > { %p4157_p1 = pneg %p4156_p0 }
0x1126   : > { %p4163_p9 = por %p4162_p8, %p4161_p12 }
0x1128   : > { %p4164_p11 = pnand %p4163_p9, %p4157_p1 }
0x112a   : > { %4167 = shalt.err (!%p4164_p11)
}
0x112b   : > { %3704 = dma.vmem_to_hbm [thread:$0]  (%p5358_p7), %s2982_s1, 128, %s5140_s16, %s2950_s29  }
0x112c   : > { %s5359_s0 = sld [smem:[#allocation51_spill]]  ;;  %s2994_s9 = sshll.u32 %s749_s21, 4  ;;  %s2995_s9 = int_to_ptr.vmem [resolvable:$true] %s2994_s9 }
0x112d   : > { %s4168_s4 = scalar_lea.vmem %s2995_s9, 128  ;;  %s4314_s30 = smov [#allocation22]  }
0x112e   : > { %p4169_p5 = scmp.ne.s32.totalorder %s2995_s9, %s4168_s4  ;;  %s4172_s19 = sshll.u32 %s4314_s30, 4  ;;  %s4173_s19 = int_to_ptr.vmem [resolvable:$false] %s4172_s19 }
0x112f   : > { %s4174_s20 = scalar_lea.vmem %s4173_s19, 256  ;;  %p4175_p6 = scmp.lt.s32.totalorder %s2995_s9, %s4173_s19 }
0x1130   : > { %p4170_p3 = pnand %p4169_p5, %p5358_p7  ;;  %p4176_p2 = scmp.lt.s32.totalorder %s4174_s20, %s4168_s4 }
0x1132   : > { %s5166_s8 = scalar_lea.hbm %s5359_s0, %s5134_s7  ;;  %p4171_p13 = pneg %p4170_p3 }
0x1133   : > { %p4177_p0 = por %p4176_p2, %p4175_p6 }
0x1135   : > { %p4178_p1 = pnand %p4177_p0, %p4171_p13 }
0x1137   : > { %4181 = shalt.err (!%p4178_p1)
}
0x1138   : > { %s4182_s21 = scalar_lea.hbm %s5166_s8, 128  ;;  %s4186_s13 = scalar_lea.hbm %s5359_s0, 256 }
0x1139   : > { %p4183_p4 = scmp.ne.s32.totalorder %s5166_s8, %s4182_s21  ;;  %p4187_p8 = scmp.lt.u32.totalorder %s5166_s8, %s5359_s0 }
0x113a   : > { %p4188_p9 = scmp.lt.u32.totalorder %s4186_s13, %s4182_s21  ;;  %p4190_p5 = scmp.lt.u32.totalorder %s4182_s21, %s5166_s8 }
0x113b   : > { %p4184_p10 = pnand %p4183_p4, %p5358_p7 }
0x113c   : > { %p4189_p11 = por %p4188_p9, %p4187_p8 }
0x113d   : > { %p4185_p12 = pneg %p4184_p10 }
0x113e   : > { %p4191_p3 = por %p4190_p5, %p4189_p11 }
0x1140   : > { %p4192_p13 = pnand %p4191_p3, %p4185_p12 }
0x1142   : > { %4195 = shalt.err (!%p4192_p13)
}
0x1143   : > { %3705 = dma.vmem_to_hbm [thread:$0]  (%p5358_p7), %s2995_s9, 128, %s5166_s8, %s2950_s29  }
0x1144   : > { %s735_s4 = scalar_lea.vmem [#allocation19], %s4776_s26  ;;  %s5360_s16 = sld [smem:[#allocation49_spill]] }
0x1145   : > { %s2968_s19 = sshll.u32 %s735_s4, 4  ;;  %s2945_s28 = scalar_lea.sflag [#allocation4], %s4773_s27  ;;  %s5197_s19 = int_to_ptr.vmem [resolvable:$true] %s2968_s19 }
0x1146   : > { %s4196_s29 = scalar_lea.vmem %s5197_s19, 128  ;;  %s4315_s26 = smov [#allocation19]  }
0x1147   : > { %p4197_p6 = scmp.ne.s32.totalorder %s5197_s19, %s4196_s29  ;;  %s4200_s8 = sshll.u32 %s4315_s26, 4  ;;  %s4201_s8 = int_to_ptr.vmem [resolvable:$false] %s4200_s8 }
0x1148   : > { %s4202_s9 = scalar_lea.vmem %s4201_s8, 256  ;;  %p4203_p1 = scmp.lt.s32.totalorder %s5197_s19, %s4201_s8 }
0x1149   : > { %p4198_p2 = pnand %p4197_p6, %p5358_p7  ;;  %p4204_p4 = scmp.lt.s32.totalorder %s4202_s9, %s4196_s29 }
0x114a   : > { %s5195_s1 = scalar_lea.hbm %s5360_s16, %s5134_s7 }
0x114b   : > { %p4199_p0 = pneg %p4198_p2  ;;  %p4205_p10 = por %p4204_p4, %p4203_p1 }
0x114d   : > { %p4206_p12 = pnand %p4205_p10, %p4199_p0 }
0x11a5   : > { %v2938_v9 = vpop.xlane.xlu1 %2937 }
0x11a6   : > { %v2939_v39 = vmul.f32 0.03125, %v2938_v9 }
0x11a8   : > { %v2940_v40 = vadd.f32 1e-05, %v2939_v39 }
0x11aa   : > { %3850 = vrsqrt.f32 %v2940_v40 }
0x11b4   : > { %v3851_v41 = vpop.eup %3850 }
0x11b5   : > { %v2942_v42 = vmul.f32 %v3851_v41, %v5114_v29 }
0x11b7   : > { %2943 = vst.msk [vmem:[%s735_s4] sm:$0xff] %vm769_vm1, %v2942_v42 }
0x11b8   : > { %4209 = shalt.err (!%p4206_p12)
}
0x11b9   : > { %s4210_s27 = scalar_lea.hbm %s5195_s1, 128  ;;  %s4214_s15 = scalar_lea.hbm %s5360_s16, 256 }
0x11ba   : > { %p4211_p8 = scmp.ne.s32.totalorder %s5195_s1, %s4210_s27  ;;  %p4215_p5 = scmp.lt.u32.totalorder %s5195_s1, %s5360_s16 }
0x11bb   : > { %p4216_p3 = scmp.lt.u32.totalorder %s4214_s15, %s4210_s27  ;;  %p4218_p6 = scmp.lt.u32.totalorder %s4210_s27, %s5195_s1 }
0x11bc   : > { %p4212_p9 = pnand %p4211_p8, %p5358_p7 }
0x11bd   : > { %p4217_p13 = por %p4216_p3, %p4215_p5 }
0x11be   : > { %p4213_p11 = pneg %p4212_p9 }
0x11bf   : > { %p4219_p2 = por %p4218_p6, %p4217_p13 }
0x11c1   : > { %p4220_p0 = pnand %p4219_p2, %p4213_p11 }
0x11c3   : > { %4223 = shalt.err (!%p4220_p0)
}
0x11c4   : > { %3703 = dma.vmem_to_hbm [thread:$0]  (%p5358_p7), %s5197_s19, 128, %s5195_s1, %s2945_s28  }
0x11c5 PF: > { %s5361_s20 = sld [smem:[#allocation32_spill]]  ;;  %s5362_s21 = sld [smem:[#allocation38_spill]] }
0x11c6   : > { %p5364_p4 = scmp.ge.s32.totalorder %s4290_s24, 2 }
0x11cb   : > { %s3006_s29 = sand.u32 1, %s5361_s20   ;;  %p5363_p1 = scmp.ne.s32.totalorder %s5362_s21, 0 }
0x11cc   : > { %s3007_s26 = scalar_lea.sflag [#allocation4], %s3006_s29 }
0x11cd   : > { %p3742_p10 = pnand %p5364_p4, %p5363_p1 }
0x11cf   : > { %4269 = dma.done.wait (!%p3742_p10), %s3007_s26, 128  }
0x11d0   : > { %4271 = vsyncadd (!%p3742_p10), %s3007_s26, 4294967168  ;;  %s5365_s8 = sadd.s32 4294967294, %s4290_s24  }
0x11d1   : > { %s3015_s9 = sand.u32 1, %s5365_s8  }
0x11d2   : > { %s3016_s27 = scalar_lea.sflag [#allocation21], %s3015_s9 }
0x11d3   : > { %4273 = dma.done.wait (!%p3742_p10), %s3016_s27, 256  }
0x11d4   : > { %4275 = vsyncadd (!%p3742_p10), %s3016_s27, 4294967040  ;;  %s5366_s24 = sld [smem:[#allocation34_spill]]  ;;  %s5367_s14 = sld [smem:[#allocation35_spill]] }
0x11d5   : > { %s5368_s21 = smov %s4282_s22  ;;  %s5369_s22 = smov %s4286_s23 }
0x11da   : > { %p42_p7 = scmp.ge.s32.totalorder %s5366_s24, 4   ;;  %s5370_s23 = smov %s5367_s14 }
0x11dc   :  { %44 = sbr.rel (!%p42_p7) target bundleno = 28 (0x1c), region = 214 }
0x11e3   :  { %3030 = vsyncpa [#allocation3], 1 }
0x11e4   :  { %3032 = vsyncpa [#allocation3 + $0x1], 1 }
0x11e5   :  { %3033 = vsyncpa [#allocation6], 1 }
0x11e6   :  { %3035 = vsyncpa [#allocation6 + $0x1], 1 }
0x11e7   :  { %3036 = vsyncpa [#allocation9], 1 }
0x11e8   :  { %3038 = vsyncpa [#allocation9 + $0x1], 1 }
0x11e9   :  { %3039 = vsyncpa [#allocation12], 1 }
0x11ea   :  { %3040 = vsyncpa [#allocation15], 1 }
0x11eb   :  { %3041 = vsyncpa [#allocation18], 1 }
0x11ec   :  { %3042 = vsyncpa [#allocation4], 1 }
0x11ed   :  { %3044 = vsyncpa [#allocation4 + $0x1], 1 }
0x11ee   :  { %3045 = vsyncpa [#allocation21], 1 }
0x11ef   :  { %3047 = vsyncpa [#allocation21 + $0x1], 1 }

</bundles_post_ra>
